<compile_context>
chip_gen: v5e
topology: v5e:2x2
jax: 0.10.0
libtpu: 0.0.40
codegen_flags: <defaults>
</compile_context>

<pallas_src>
import jax
import jax.numpy as jnp
from jax.experimental import pallas as pl
from jax.experimental.pallas import tpu as pltpu

IN_DIM = 1
HIDDEN = 32
OUT_DIM = 1


def _swish(h):
    # Swish(x) = x * sigmoid(x)
    return h * jax.nn.sigmoid(h)


def swishnet_kernel(x_ref, w1_ref, b1_ref, w2_ref, b2_ref, w3_ref, b3_ref, o_ref):
    x = x_ref[...]                                                  # (1, BN)  batch on lanes
    # Layer 1: in_features == 1 -> outer-product broadcast on the VPU (no MXU pass).
    h1 = _swish(w1_ref[...] * x + b1_ref[...])                      # (32, BN)
    # Layer 2: the only real matmul, (32,32) @ (32,BN) on the MXU.
    h2 = jnp.dot(w2_ref[...], h1, preferred_element_type=jnp.float32) + b2_ref[...]
    h2 = _swish(h2)                                                 # (32, BN)
    # Layer 3: out_features == 1 -> elementwise mul + sublane reduction.
    y = jnp.sum(h2 * w3_ref[...], axis=0, keepdims=True) + b3_ref[...]   # (1, BN)
    o_ref[...] = y.astype(o_ref.dtype)


def swishnet_forward(x, params, *, block_n=1024):
    """x: [N, 1] float32. params: torch-convention ([out, in]) weights/biases."""
    assert block_n % 128 == 0, "block_n must be a multiple of 128 (lane width)"
    n = x.shape[0]
    g = pl.cdiv(n, block_n)
    n_pad = g * block_n

    x_flat = x.reshape(n).astype(jnp.float32)
    if n_pad != n:
        x_flat = jnp.pad(x_flat, (0, n_pad - n))
    x3 = x_flat.reshape(g, 1, block_n)                 # batch on lanes

    # Weights arranged so the kernel computes W @ h + b (features, batch layout),
    # exactly matching torch.nn.Linear's  y = x @ W^T + b.
    w1 = params["w1"].reshape(HIDDEN, IN_DIM)          # (32, 1)  torch [out, in]
    b1 = params["b1"].reshape(HIDDEN, 1)               # (32, 1)
    w2 = params["w2"]                                  # (32, 32) torch [out, in]
    b2 = params["b2"].reshape(HIDDEN, 1)               # (32, 1)
    w3 = params["w3"].T                                # (32, 1)  from torch (1, 32)
    b3 = params["b3"].reshape(OUT_DIM, 1)              # (1, 1)

    def full(shape):
        return pl.BlockSpec(shape, lambda i: (0, 0))   # VMEM-resident, fetched once

    # Advisory cost hint so XLA schedules surrounding ops sensibly.
    cost = pl.CostEstimate(
        flops=int(n_pad * (2 * HIDDEN + 2 * HIDDEN * HIDDEN + 2 * HIDDEN + 4 * HIDDEN)),
        transcendentals=int(n_pad * 2 * HIDDEN),
        bytes_accessed=int(n_pad * 8 + 4 * (HIDDEN * HIDDEN + 4 * HIDDEN + 2)),
    )

    out = pl.pallas_call(
        swishnet_kernel,
        out_shape=jax.ShapeDtypeStruct((g, 1, block_n), jnp.float32),
        grid_spec=pltpu.PrefetchScalarGridSpec(
            num_scalar_prefetch=0,
            grid=(g,),
            in_specs=[
                pl.BlockSpec((None, 1, block_n), lambda i: (i, 0, 0)),   # x tile (lane-dense)
                full((HIDDEN, IN_DIM)),                                  # w1
                full((HIDDEN, 1)),                                       # b1
                full((HIDDEN, HIDDEN)),                                  # w2
                full((HIDDEN, 1)),                                       # b2
                full((HIDDEN, OUT_DIM)),                                 # w3
                full((OUT_DIM, 1)),                                      # b3
            ],
            out_specs=pl.BlockSpec((None, 1, block_n), lambda i: (i, 0, 0)),
        ),
        compiler_params=pltpu.CompilerParams(
            dimension_semantics=("parallel",)),
        cost_estimate=cost,
    )(x3, w1, b1, w2, b2, w3, b3)

    return out.reshape(n_pad)[:n].reshape(n, OUT_DIM).astype(x.dtype)


def init_params(key):
    """Deterministic init; shapes follow torch.nn.Linear ([out, in] weights)."""
    k1, k2, k3, k4, k5, k6 = jax.random.split(key, 6)
    scale = 0.1
    return {
        "w1": scale * jax.random.normal(k1, (HIDDEN, IN_DIM), jnp.float32),
        "b1": scale * jax.random.normal(k2, (HIDDEN,), jnp.float32),
        "w2": scale * jax.random.normal(k3, (HIDDEN, HIDDEN), jnp.float32),
        "b2": scale * jax.random.normal(k4, (HIDDEN,), jnp.float32),
        "w3": scale * jax.random.normal(k5, (OUT_DIM, HIDDEN), jnp.float32),
        "b3": scale * jax.random.normal(k6, (OUT_DIM,), jnp.float32),
    }


def swishnet_ref(x, p):
    def sw(h):
        return h * jax.nn.sigmoid(h)
    h1 = sw(x @ p["w1"].T + p["b1"])
    h2 = sw(h1 @ p["w2"].T + p["b2"])
    return h2 @ p["w3"].T + p["b3"]


if __name__ == "__main__":
    key = jax.random.PRNGKey(0)
    params = init_params(key)

    # Same spirit as the original script: 1-D inputs in [-3, 3], shape [N, 1].
    # N is deliberately not a multiple of block_n to exercise the padding path;
    # block_n=1024 gives a grid of 2 parallel steps (balanced for 2-TC chips).
    n = 2000
    x = jnp.linspace(-3.0, 3.0, n, dtype=jnp.float32).reshape(n, 1)

    y = swishnet_forward(x, params, block_n=1024)
    y = jax.block_until_ready(y)

    y_ref = swishnet_ref(x, params)
    assert y.shape == (n, 1)
    assert jnp.allclose(y, y_ref, atol=1e-5, rtol=1e-5), "mismatch vs reference"

    print("KERNEL_OK")
</pallas_src>

<mosaic_0001>
module attributes {stable_mosaic.version = 11 : i64} {
  func.func @swishnet_kernel(%arg0: i32, %arg1: memref<1x1x1024xf32, #tpu.memory_space<vmem>>, %arg2: memref<32x1xf32, #tpu.memory_space<vmem>>, %arg3: memref<32x1xf32, #tpu.memory_space<vmem>>, %arg4: memref<32x32xf32, #tpu.memory_space<vmem>>, %arg5: memref<32x1xf32, #tpu.memory_space<vmem>>, %arg6: memref<32x1xf32, #tpu.memory_space<vmem>>, %arg7: memref<1x1xf32, #tpu.memory_space<vmem>>, %arg8: memref<1x1x1024xf32, #tpu.memory_space<vmem>>) attributes {dimension_semantics = [#tpu.dimension_semantics<parallel>], iteration_bounds = array<i64: 2>, scalar_prefetch = 0 : i64, scratch_operands = 0 : i64, tpu.core_type = #tpu.core_type<tc>, window_params = [{transform_indices = @transform_0, window_bounds = array<i64: 1, 1, 1024>}, {pipeline_mode = #tpu.pipeline_mode<synchronous>, transform_indices = @transform_1, window_bounds = array<i64: 32, 1>}, {pipeline_mode = #tpu.pipeline_mode<synchronous>, transform_indices = @transform_2, window_bounds = array<i64: 32, 1>}, {pipeline_mode = #tpu.pipeline_mode<synchronous>, transform_indices = @transform_3, window_bounds = array<i64: 32, 32>}, {pipeline_mode = #tpu.pipeline_mode<synchronous>, transform_indices = @transform_4, window_bounds = array<i64: 32, 1>}, {pipeline_mode = #tpu.pipeline_mode<synchronous>, transform_indices = @transform_5, window_bounds = array<i64: 32, 1>}, {pipeline_mode = #tpu.pipeline_mode<synchronous>, transform_indices = @transform_6, window_bounds = array<i64: 1, 1>}, {transform_indices = @transform_7, window_bounds = array<i64: 1, 1, 1024>}]} {
    %c0 = arith.constant 0 : index
    %c0_0 = arith.constant 0 : index
    %c0_1 = arith.constant 0 : index
    %0 = vector.load %arg1[%c0, %c0_0, %c0_1] : memref<1x1x1024xf32, #tpu.memory_space<vmem>>, vector<1x1x1024xf32>
    %1 = vector.shape_cast %0 : vector<1x1x1024xf32> to vector<1x1024xf32>
    %c0_2 = arith.constant 0 : index
    %c0_3 = arith.constant 0 : index
    %2 = vector.load %arg2[%c0_2, %c0_3] : memref<32x1xf32, #tpu.memory_space<vmem>>, vector<32x1xf32>
    %3 = vector.broadcast %2 : vector<32x1xf32> to vector<32x1024xf32>
    %4 = vector.broadcast %1 : vector<1x1024xf32> to vector<32x1024xf32>
    %5 = arith.mulf %3, %4 : vector<32x1024xf32>
    %c0_4 = arith.constant 0 : index
    %c0_5 = arith.constant 0 : index
    %6 = vector.load %arg3[%c0_4, %c0_5] : memref<32x1xf32, #tpu.memory_space<vmem>>, vector<32x1xf32>
    %7 = vector.broadcast %6 : vector<32x1xf32> to vector<32x1024xf32>
    %8 = arith.addf %5, %7 : vector<32x1024xf32>
    %9 = arith.negf %8 : vector<32x1024xf32>
    %10 = math.exp %9 : vector<32x1024xf32>
    %cst = arith.constant 1.000000e+00 : f32
    %11 = vector.broadcast %cst : f32 to vector<32x1024xf32>
    %12 = arith.addf %11, %10 : vector<32x1024xf32>
    %13 = arith.divf %11, %12 : vector<32x1024xf32>
    %14 = arith.mulf %8, %13 : vector<32x1024xf32>
    %c0_6 = arith.constant 0 : index
    %c0_7 = arith.constant 0 : index
    %15 = vector.load %arg4[%c0_6, %c0_7] : memref<32x32xf32, #tpu.memory_space<vmem>>, vector<32x32xf32>
    %cst_8 = arith.constant dense<0.000000e+00> : vector<32x1024xf32>
    %16 = tpu.matmul %15, %14, %cst_8 {dimension_numbers = #tpu.dot_dimension_numbers<[1], [0], [0], [1], [0, 0, 1, 1], [], []>} : vector<32x32xf32>, vector<32x1024xf32>, vector<32x1024xf32> -> vector<32x1024xf32>
    %c0_9 = arith.constant 0 : index
    %c0_10 = arith.constant 0 : index
    %17 = vector.load %arg5[%c0_9, %c0_10] : memref<32x1xf32, #tpu.memory_space<vmem>>, vector<32x1xf32>
    %18 = vector.broadcast %17 : vector<32x1xf32> to vector<32x1024xf32>
    %19 = arith.addf %16, %18 : vector<32x1024xf32>
    %20 = arith.negf %19 : vector<32x1024xf32>
    %21 = math.exp %20 : vector<32x1024xf32>
    %cst_11 = arith.constant 1.000000e+00 : f32
    %22 = vector.broadcast %cst_11 : f32 to vector<32x1024xf32>
    %23 = arith.addf %22, %21 : vector<32x1024xf32>
    %24 = arith.divf %22, %23 : vector<32x1024xf32>
    %25 = arith.mulf %19, %24 : vector<32x1024xf32>
    %c0_12 = arith.constant 0 : index
    %c0_13 = arith.constant 0 : index
    %26 = vector.load %arg6[%c0_12, %c0_13] : memref<32x1xf32, #tpu.memory_space<vmem>>, vector<32x1xf32>
    %27 = vector.broadcast %26 : vector<32x1xf32> to vector<32x1024xf32>
    %28 = arith.mulf %25, %27 : vector<32x1024xf32>
    %cst_14 = arith.constant dense<0.000000e+00> : vector<1024xf32>
    %29 = vector.multi_reduction <add>, %28, %cst_14 [0] : vector<32x1024xf32> to vector<1024xf32>
    %30 = vector.shape_cast %29 : vector<1024xf32> to vector<1x1024xf32>
    %c0_15 = arith.constant 0 : index
    %c0_16 = arith.constant 0 : index
    %31 = vector.load %arg7[%c0_15, %c0_16] : memref<1x1xf32, #tpu.memory_space<vmem>>, vector<1x1xf32>
    %32 = vector.broadcast %31 : vector<1x1xf32> to vector<1x1024xf32>
    %33 = arith.addf %30, %32 : vector<1x1024xf32>
    %c0_17 = arith.constant 0 : index
    %c0_18 = arith.constant 0 : index
    %c0_19 = arith.constant 0 : index
    %34 = vector.load %arg8[%c0_17, %c0_18, %c0_19] : memref<1x1x1024xf32, #tpu.memory_space<vmem>>, vector<1x1x1024xf32>
    %35 = vector.shape_cast %34 : vector<1x1x1024xf32> to vector<1x1024xf32>
    %36 = vector.shape_cast %33 : vector<1x1024xf32> to vector<1x1x1024xf32>
    tpu.vector_store %arg8[%c0_17, %c0_18, %c0_19], %36 {strides = array<i32>} : memref<1x1x1024xf32, #tpu.memory_space<vmem>>, vector<1x1x1024xf32>,
    return
  }
  func.func @transform_0(%arg0: i32) -> (i32, i32, i32) {
    %c0_i32 = arith.constant 0 : i32
    %c0_i32_0 = arith.constant 0 : i32
    %c0_i32_1 = arith.constant 0 : i32
    return %arg0, %c0_i32, %c0_i32_0 : i32, i32, i32
  }
  func.func @transform_1(%arg0: i32) -> (i32, i32) {
    %c0_i32 = arith.constant 0 : i32
    %c0_i32_0 = arith.constant 0 : i32
    %c0_i32_1 = arith.constant 0 : i32
    return %c0_i32, %c0_i32_0 : i32, i32
  }
  func.func @transform_2(%arg0: i32) -> (i32, i32) {
    %c0_i32 = arith.constant 0 : i32
    %c0_i32_0 = arith.constant 0 : i32
    %c0_i32_1 = arith.constant 0 : i32
    return %c0_i32, %c0_i32_0 : i32, i32
  }
  func.func @transform_3(%arg0: i32) -> (i32, i32) {
    %c0_i32 = arith.constant 0 : i32
    %c0_i32_0 = arith.constant 0 : i32
    %c0_i32_1 = arith.constant 0 : i32
    return %c0_i32, %c0_i32_0 : i32, i32
  }
  func.func @transform_4(%arg0: i32) -> (i32, i32) {
    %c0_i32 = arith.constant 0 : i32
    %c0_i32_0 = arith.constant 0 : i32
    %c0_i32_1 = arith.constant 0 : i32
    return %c0_i32, %c0_i32_0 : i32, i32
  }
  func.func @transform_5(%arg0: i32) -> (i32, i32) {
    %c0_i32 = arith.constant 0 : i32
    %c0_i32_0 = arith.constant 0 : i32
    %c0_i32_1 = arith.constant 0 : i32
    return %c0_i32, %c0_i32_0 : i32, i32
  }
  func.func @transform_6(%arg0: i32) -> (i32, i32) {
    %c0_i32 = arith.constant 0 : i32
    %c0_i32_0 = arith.constant 0 : i32
    %c0_i32_1 = arith.constant 0 : i32
    return %c0_i32, %c0_i32_0 : i32, i32
  }
  func.func @transform_7(%arg0: i32) -> (i32, i32, i32) {
    %c0_i32 = arith.constant 0 : i32
    %c0_i32_0 = arith.constant 0 : i32
    %c0_i32_1 = arith.constant 0 : i32
    return %arg0, %c0_i32, %c0_i32_0 : i32, i32, i32
  }
}

</mosaic_0001>

<bundles_post_ra>
// kernel: tpu_custom_call.1
= control target key start
LH: loop header
LB: loop body
LE: loop exit
PB: predicated region body
PF: predicated region fallthrough
CT: control target
= control target key end

     0   :  { %s4714_s0 = inlined_call_operand.vmem [shape: f32[2,1,1024], index: 0, kind: input, shape index: {}]   ;;  %s4715_s1 = inlined_call_operand.vmem [shape: f32[32,1], index: 1, kind: input, shape index: {}]   ;;  %s4716_s2 = inlined_call_operand.vmem [shape: f32[32,1], index: 2, kind: input, shape index: {}]   ;;  %s4717_s3 = inlined_call_operand.vmem [shape: f32[32,32], index: 3, kind: input, shape index: {}]   ;;  %s4718_s4 = inlined_call_operand.vmem [shape: f32[32,1], index: 4, kind: input, shape index: {}]   ;;  %s4719_s5 = inlined_call_operand.vmem [shape: f32[32,1], index: 5, kind: input, shape index: {}]   ;;  %s4720_s6 = inlined_call_operand.<no memory space> [shape: f32[1,1], index: 6, kind: input, shape index: {}]   ;;  %s4721_s7 = inlined_call_operand.hbm [shape: f32[2,1,1024], index: 7, kind: output, shape index: {}]  }
   0x1   :  { %v12_v0 = vstv %s4720_s6 }
   0x2   :  { %13 = vst [vmem:[#allocation2] sm:$0x1] %v12_v0 }
   0x3   :  { %14 = vsyncpa [#allocation4], 0 }
   0x4   :  { %16 = vsyncpa [#allocation4 + $0x1], 0  ;;  %s2721_s26 = smov 0   ;;  %s2723_s27 = smov 0  }
   0x5   :  { %s2725_s28 = smov 0   ;;  %s2727_s29 = smov 0  }
   0x6 LB: > { %s2742_s6 = sadd.s32 4294967295, %s2675_s29   ;;  %s2208_s30 = sadd.s32 4294967294, %s2675_s29   ;;  %s2675_s29 = sphi %s2727_s29, %s4872_s29   ;;  %s2671_s28 = sphi %s2725_s28, %s4871_s28   ;;  %s2667_s27 = sphi %s2723_s27, %s4870_s27   ;;  %s2663_s26 = sphi %s2721_s26, %s4869_s26  }
   0x7   : > { %s2746_s8 = sadd.s32 1, %s2675_s29   ;;  %s181_s9 = sadd.s32 1, %s2671_s28 }
   0x8   : > { %s178_s10 = ssub.s32 %s2675_s29, %s2746_s8  ;;  %p191_p0 = scmp.ne.s32.totalorder %s2671_s28, %s2667_s27 }
   0x9   : > { %p179_p1 = scmp.eq.s32.totalorder %s178_s10, 0  ;;  %p192_p2 = scmp.eq.s32.totalorder %s2742_s6, 1 }
   0xa   : > { %p197_p3 = scmp.ne.s32.totalorder %s2667_s27, %s2663_s26  ;;  %p198_p4 = scmp.eq.s32.totalorder %s2208_s30, 1 }
   0xb   : > { %s2757_s11 = scalar_select %p179_p1, %s2671_s28, %s181_s9  }
   0xc   : > { %p2759_p5 = por %p192_p2, %p191_p0  ;;  %p2763_p6 = por %p198_p4, %p197_p3 }
   0xd   : > { %p2211_p7 = scmp.ge.s32.totalorder %s2675_s29, 1  ;;  %p241_p8 = scmp.lt.s32.totalorder %s2675_s29, 3 }
   0xf   : > { %p242_p9 = pnand %p2211_p7, %p241_p8 }
  0x10   : > { %p272_p10 = scmp.lt.s32.totalorder (!%p242_p9), %s2742_s6, 1  ;;  %s269_s14 = sand.u32 (!%p242_p9), 1, %s2667_s27  }
  0x11   : > { %245 = sbr.rel (%p242_p9) target bundleno = 570 (0x23a), region = 48  ;;  %s4678_s15 = sshll.u32 (!%p242_p9), %s269_s14, 3 }
  0x12   : > { %s2134_s22 = scalar_lea.sflag (!%p242_p9), [#allocation4], %s269_s14  ;;  %s2633_s9 = scalar_lea.hbm (!%p242_p9), %s4721_s7, 16 }
  0x16   : > { %v352_v1 = vld [vmem:[%s4716_s2 + $0x10] sm:$0xff]  ;;  %v353_v2 = vld [vmem:[%s4716_s2 + $0x18] sm:$0xff]  ;;  %v2677_v4 = vmov 0   ;;  %v277_v5 = vld [vmem:[%s4715_s1] sm:$0xff]  ;;  %s273_s16 = scalar_select %p272_p10, %s2742_s6, 1 }
  0x17   : > { %v280_v3 = vld [vmem:[%s4715_s1 + $0x18] sm:$0xff]  ;;  %2356 = vset.pattern.permute.xlu2 %v2677_v4  ;;  %2355 = vset.pattern.permute.xlu1 %v2677_v4  ;;  %v279_v6 = vld [vmem:[%s4715_s1 + $0x10] sm:$0xff]  ;;  %v278_v7 = vld [vmem:[%s4715_s1 + $0x8] sm:$0xff] }
  0x18   : > { %2354 = vset.pattern.permute.xlu0 %v2677_v4  ;;  %366 = vperm.xlu2 %2356, %v352_v1   ;;  %v1050_v8 = vld [vmem:[%s4718_s4] sm:$0xff]  ;;  %v351_v9 = vld [vmem:[%s4716_s2 + $0x8] sm:$0xff]  ;;  %v1053_v11 = vld [vmem:[%s4718_s4 + $0x18] sm:$0xff]  ;;  %s2213_s17 = sshll.u32 %s273_s16, 3  ;;  %s2311_s16 = sshll.u32 %s2742_s6, 3 }
  0x19   : > { %371 = vperm.xlu1 %2355, %v353_v2   ;;  %298 = vperm.xlu0 %2354, %v280_v3   ;;  %v350_v10 = vld [vmem:[%s4716_s2] sm:$0xff]  ;;  %v1051_v12 = vld [vmem:[%s4718_s4 + $0x8] sm:$0xff]  ;;  %v1052_v13 = vld [vmem:[%s4718_s4 + $0x10] sm:$0xff]  ;;  %s275_s20 = scalar_lea.vmem %s4714_s0, %s2213_s17  ;;  %s2144_s19 = scalar_lea.hbm %s4721_s7, %s2311_s16 }
  0x1a   : > { %v1961_v14 = vld [vmem:[%s4719_s5 + $0x10] sm:$0xff]  ;;  %v1959_v15 = vld [vmem:[%s4719_s5] sm:$0xff]  ;;  %v1960_v16 = vld [vmem:[%s4719_s5 + $0x8] sm:$0xff]  ;;  %s271_s6 = scalar_lea.vmem [#allocation3], %s4678_s15  ;;  %s2148_s21 = sshll.u32 %s2144_s19, 4  ;;  %s2149_s21 = int_to_ptr.hbm [resolvable:$true] %s2148_s21 }
  0x1b   : > { %v1962_v17 = vld [vmem:[%s4719_s5 + $0x18] sm:$0xff]  ;;  %v2087_v18 = vld [vmem:[#allocation2] sm:$0x1]  ;;  %s2627_s23 = sshra.s32 %s2149_s21, 4  ;;  %s2628_s23 = int_to_ptr.hbm [resolvable:$true] %s2627_s23 }
  0x1c   : > { %v2822_v19 = vld [vmem:[%s275_s20] sm:$0xff]  ;;  %s2146_s20 = sshll.u32 %s271_s6, 4  ;;  %s2629_s24 = scalar_lea.hbm %s2628_s23, 8  ;;  %s2147_s20 = int_to_ptr.vmem [resolvable:$true] %s2146_s20 }
  0x1d   : > { %v302_v20 = vperm.slane %v2822_v19, 0  ;;  %v303_v21 = vperm.slane %v2822_v19, 1  ;;  %v304_v22 = vperm.slane %v2822_v19, 2  ;;  %v2828_v23 = vperm.slane %v2822_v19, 3  ;;  %p2630_p11 = scmp.ne.s32.totalorder %s2628_s23, %s2629_s24  ;;  %p2634_p0 = scmp.lt.s32.totalorder %s2628_s23, %s4721_s7 }
  0x1e   : > { %p2635_p1 = scmp.lt.s32.totalorder %s2633_s9, %s2629_s24 }
  0x1f   : > { %p2631_p12 = pnand %p2630_p11, %p2759_p5 }
  0x20   : > { %283 = vperm.xlu2 %2356, %v277_v5   ;;  %p2636_p2 = por %p2635_p1, %p2634_p0 }
  0x21   : > { %293 = vperm.xlu0 %2354, %v279_v6   ;;  %288 = vperm.xlu1 %2355, %v278_v7   ;;  %p2632_p13 = pneg %p2631_p12 }
  0x23   : > { %p2637_p3 = pnand %p2636_p2, %p2632_p13 }
  0x28   : > { %1056 = vperm.xlu2 %2356, %v1050_v8  }
  0x29   : > { %361 = vperm.xlu0 %2354, %v351_v9   ;;  %356 = vperm.xlu1 %2355, %v350_v10  }
  0x30   : > { %1071 = vperm.xlu2 %2356, %v1053_v11  }
  0x31   : > { %1061 = vperm.xlu0 %2354, %v1051_v12   ;;  %1066 = vperm.xlu1 %2355, %v1052_v13  }
  0x38   : > { %1975 = vperm.xlu2 %2356, %v1961_v14  }
  0x39   : > { %1965 = vperm.xlu0 %2354, %v1959_v15   ;;  %1970 = vperm.xlu1 %2355, %v1960_v16  }
  0x41   : > { %1980 = vperm.xlu0 %2354, %v1962_v17   ;;  %2090 = vperm.xlu1 %2355, %v2087_v18  }
  0x72   : > { %v2851_v34 = vpop.permute.xlu2 %366 }
  0x7a   : > { %v2875_v52 = vpop.permute.xlu2 %283 }
  0x7b   : > { %v2882_v56 = vmul.f32 %v302_v20, %v2875_v52  ;;  %v2912_v5 = vmul.f32 %v303_v21, %v2875_v52  ;;  %v2918_v9 = vmul.f32 %v304_v22, %v2875_v52 }
  0x8b   : > { %v2830_v24 = vpop.permute.xlu0 %298  ;;  %v2837_v29 = vpop.permute.xlu1 %371 }
  0x8c   : > { %v342_v25 = vmul.f32 %v302_v20, %v2830_v24  ;;  %v343_v26 = vmul.f32 %v303_v21, %v2830_v24  ;;  %v344_v27 = vmul.f32 %v304_v22, %v2830_v24  ;;  %v345_v28 = vmul.f32 %v2828_v23, %v2830_v24 }
  0x8e   : > { %v2840_v30 = vadd.f32 %v2837_v29, %v342_v25  ;;  %v2843_v31 = vadd.f32 %v2837_v29, %v343_v26  ;;  %v2846_v32 = vadd.f32 %v2837_v29, %v344_v27  ;;  %v2849_v33 = vadd.f32 %v2837_v29, %v345_v28 }
  0x90   : > { %v2238_v35 = vmul.f32 -1.442695, %v2840_v30  ;;  %v2239_v36 = vmul.f32 -1.442695, %v2843_v31  ;;  %v2240_v37 = vmul.f32 -1.442695, %v2846_v32 }
  0x91   : > { %v2241_v38 = vmul.f32 -1.442695, %v2849_v33 }
  0x92   : > { %2357 = vpow2.f32 %v2238_v35 }
  0x93   : > { %v2857_v39 = vpop.permute.xlu0 %293  ;;  %2359 = vpow2.f32 %v2239_v36  ;;  %v2871_v49 = vpop.permute.xlu1 %288 }
  0x94   : > { %2361 = vpow2.f32 %v2240_v37  ;;  %v334_v40 = vmul.f32 %v302_v20, %v2857_v39  ;;  %v335_v41 = vmul.f32 %v303_v21, %v2857_v39  ;;  %v336_v46 = vmul.f32 %v304_v22, %v2857_v39 }
  0x95   : > { %2363 = vpow2.f32 %v2241_v38  ;;  %v337_v47 = vmul.f32 %v2828_v23, %v2857_v39  ;;  %v326_v59 = vmul.f32 %v302_v20, %v2871_v49  ;;  %v2897_v62 = vmul.f32 %v303_v21, %v2871_v49 }
  0x96   : > { %v2862_v42 = vadd.f32 %v2851_v34, %v334_v40  ;;  %v2865_v43 = vadd.f32 %v2851_v34, %v335_v41  ;;  %v2886_v57 = vadd.f32 %v2851_v34, %v336_v46  ;;  %v2900_v63 = vmul.f32 %v304_v22, %v2871_v49 }
  0x97   : > { %v2889_v58 = vadd.f32 %v2851_v34, %v337_v47  ;;  %v2906_v2 = vmul.f32 %v2828_v23, %v2871_v49 }
  0x98   : > { %v2358_v44 = vpop.eup %2357  ;;  %v2230_v45 = vmul.f32 -1.442695, %v2862_v42  ;;  %v2231_v54 = vmul.f32 -1.442695, %v2865_v43  ;;  %v2232_v7 = vmul.f32 -1.442695, %v2886_v57 }
  0x99   : > { %v2360_v48 = vpop.eup %2359  ;;  %v2873_v50 = vadd.f32 1.0, %v2358_v44  ;;  %v2233_v8 = vmul.f32 -1.442695, %v2889_v58 }
  0x9a   : > { %v2362_v51 = vpop.eup %2361  ;;  %v2877_v53 = vadd.f32 1.0, %v2360_v48  ;;  %2365 = vpow2.f32 %v2230_v45 }
  0x9b   : > { %v2364_v55 = vpop.eup %2363  ;;  %2367 = vrcp.f32 %v2873_v50  ;;  %v2892_v60 = vadd.f32 1.0, %v2362_v51  ;;  %v903_v0 = vand.u32 2147483647, %v2873_v50  ;;  %v905_v1 = vand.u32 2147483648, %v2873_v50  ;;  %v2920_v11 = vpop.permute.xlu0 %361 }
  0x9c   : > { %2369 = vrcp.f32 %v2877_v53  ;;  %v2894_v61 = vadd.f32 1.0, %v2364_v55  ;;  %v918_v3 = vand.u32 2147483647, %v2877_v53  ;;  %v920_v4 = vand.u32 2147483648, %v2877_v53 }
  0x9d   : > { %2371 = vpow2.f32 %v2231_v54  ;;  %vm899_vm0 = vweird.f32 %v2873_v50  ;;  %vm914_vm1 = vweird.f32 %v2877_v53  ;;  %v935_v12 = vand.u32 2147483648, %v2892_v60 }
  0x9e   : > { %2373 = vrcp.f32 %v2892_v60  ;;  %vm2928_vm2 = vcmp.eq.f32.partialorder %v903_v0, 8.507059e+37  ;;  %v906_v17 = vor.u32 1.1754944e-38, %v905_v1  ;;  %v933_v18 = vand.u32 2147483647, %v2892_v60 }
  0x9f   : > { %2375 = vrcp.f32 %v2894_v61  ;;  %v950_v20 = vand.u32 2147483648, %v2894_v61  ;;  %vm2935_vm3 = vcmp.eq.f32.partialorder %v918_v3, 8.507059e+37  ;;  %v921_v25 = vor.u32 1.1754944e-38, %v920_v4 }
  0xa0   : > { %v2366_v6 = vpop.eup %2365  ;;  %v948_v26 = vand.u32 2147483647, %v2894_v61  ;;  %vm929_vm4 = vweird.f32 %v2892_v60  ;;  %v2943_v35 = vadd.f32 %v2920_v11, %v326_v59  ;;  %v936_v38 = vor.u32 1.1754944e-38, %v935_v12 }
  0xa1   : > { %v2368_v10 = vpop.eup %2367  ;;  %v2925_v13 = vadd.f32 1.0, %v2366_v6  ;;  %vm944_vm5 = vweird.f32 %v2894_v61  ;;  %vm2949_vm7 = vcmp.eq.f32.partialorder %v933_v18, 8.507059e+37  ;;  %v951_v47 = vor.u32 1.1754944e-38, %v950_v20 }
  0xa2   : > { %v2370_v14 = vpop.eup %2369  ;;  %v895_v15 = vmul.f32 %v2368_v10, %v2873_v50  ;;  %vm900_vm6 = vweird.f32 %v2368_v10  ;;  %vm2954_vm9 = vcmp.eq.f32.partialorder %v948_v26, 8.507059e+37  ;;  %v3001_v46 = vadd.f32 %v2920_v11, %v2897_v62 }
  0xa3   : > { %v910_v21 = vmul.f32 %v2370_v14, %v2877_v53  ;;  %2377 = vrcp.f32 %v2925_v13  ;;  %v2372_v27 = vpop.eup %2371  ;;  %vm915_vm8 = vweird.f32 %v2370_v14  ;;  %v783_v55 = vand.u32 2147483647, %v2925_v13  ;;  %vm901_vm11 = vmor %vm899_vm0, %vm900_vm6 }
  0xa4   : > { %v896_v28 = vsub.f32 1.0, %v895_v15  ;;  %2379 = vpow2.f32 %v2232_v7  ;;  %v2374_v36 = vpop.eup %2373  ;;  %v2946_v40 = vadd.f32 1.0, %v2372_v27  ;;  %vm779_vm10 = vweird.f32 %v2925_v13  ;;  %vm916_vm13 = vmor %vm914_vm1, %vm915_vm8 }
  0xa5   : > { %v911_v37 = vsub.f32 1.0, %v910_v21  ;;  %2381 = vpow2.f32 %v2233_v8  ;;  %v2376_v41 = vpop.eup %2375  ;;  %v925_v45 = vmul.f32 %v2374_v36, %v2892_v60  ;;  %v785_v1 = vand.u32 2147483648, %v2925_v13 }
  0xa6   : > { %v897_v44 = vmul.f32 %v2368_v10, %v896_v28  ;;  %v940_v51 = vmul.f32 %v2376_v41, %v2894_v61  ;;  %2383 = vrcp.f32 %v2946_v40  ;;  %vm930_vm12 = vweird.f32 %v2374_v36 }
  0xa7   : > { %v912_v48 = vmul.f32 %v2370_v14, %v911_v37  ;;  %v926_v0 = vsub.f32 1.0, %v925_v45  ;;  %v2222_v7 = vmul.f32 -1.442695, %v2943_v35  ;;  %vm945_vm14 = vweird.f32 %v2376_v41  ;;  %vm931_vm15 = vmor %vm929_vm4, %vm930_vm12 }
  0xa8   : > { %v898_v59 = vadd.f32 %v2368_v10, %v897_v44  ;;  %v941_v6 = vsub.f32 1.0, %v940_v51  ;;  %v798_v27 = vand.u32 2147483647, %v2946_v40  ;;  %vm946_vm1 = vmor %vm944_vm5, %vm945_vm14  ;;  %vm794_vm4 = vweird.f32 %v2946_v40 }
  0xa9   : > { %v2378_v3 = vpop.eup %2377  ;;  %v913_v4 = vadd.f32 %v2370_v14, %v912_v48  ;;  %v927_v15 = vmul.f32 %v2374_v36, %v926_v0  ;;  %2385 = vpow2.f32 %v2222_v7  ;;  %v800_v48 = vand.u32 2147483648, %v2946_v40  ;;  %v3009_v0 = vpop.permute.xlu1 %356 }
  0xaa   : > { %v2380_v8 = vpop.eup %2379  ;;  %v902_v12 = vsel %vm901_vm11, %v2368_v10, %v898_v59  ;;  %v775_v18 = vmul.f32 %v2378_v3, %v2925_v13  ;;  %v942_v26 = vmul.f32 %v2376_v41, %v941_v6  ;;  %vm780_vm0 = vweird.f32 %v2378_v3 }
  0xab   : > { %v2382_v20 = vpop.eup %2381  ;;  %v907_v50 = vsel %vm2928_vm2, %v906_v17, %v902_v12  ;;  %v917_v21 = vsel %vm916_vm13, %v2370_v14, %v913_v4  ;;  %v928_v37 = vadd.f32 %v2374_v36, %v927_v15  ;;  %v2980_v16 = vadd.f32 1.0, %v2380_v8  ;;  %vm781_vm2 = vmor %vm779_vm10, %vm780_vm0 }
  0xac   : > { %v1038_v28 = vmul.f32 %v907_v50, %v2840_v30  ;;  %v922_v10 = vsel %vm2935_vm3, %v921_v25, %v917_v21  ;;  %v776_v53 = vsub.f32 1.0, %v775_v18  ;;  %v943_v45 = vadd.f32 %v2376_v41, %v942_v26  ;;  %v2384_v14 = vpop.eup %2383 }
  0xad   : > { %v1039_v44 = vmul.f32 %v922_v10, %v2843_v31  ;;  %v932_v17 = vsel %vm931_vm15, %v2374_v36, %v928_v37  ;;  %v2985_v22 = vadd.f32 1.0, %v2382_v20  ;;  %v790_v25 = vmul.f32 %v2384_v14, %v2946_v40 }
  0xae   : > { %1099 = vmatpush.msra.mxu0 %v1038_v28  ;;  %v777_v30 = vmul.f32 %v2378_v3, %v776_v53  ;;  %v937_v31 = vsel %vm2949_vm7, %v936_v38, %v932_v17  ;;  %v947_v60 = vsel %vm946_vm1, %v2376_v41, %v943_v45  ;;  %2387 = vrcp.f32 %v2980_v16 }
  0xaf   : > { %1128 = vmatpush.msra.mxu1 %v1039_v44  ;;  %v1040_v51 = vmul.f32 %v937_v31, %v2846_v32  ;;  %v952_v36 = vsel %vm2954_vm9, %v951_v47, %v947_v60  ;;  %v786_v38 = vor.u32 1.1754944e-38, %v785_v1  ;;  %v791_v41 = vsub.f32 1.0, %v790_v25  ;;  %v2386_v54 = vpop.eup %2385 }
  0xb0   : > { %v778_v61 = vadd.f32 %v2378_v3, %v777_v30  ;;  %v1041_v59 = vmul.f32 %v952_v36, %v2849_v33  ;;  %vm784_vm3 = vcmp.eq.f32.partialorder %v783_v55, 8.507059e+37  ;;  %2389 = vrcp.f32 %v2985_v22 }
  0xb1   : > { %1157 = vmatpush.msra.mxu2 %v1040_v51  ;;  %v792_v33 = vmul.f32 %v2384_v14, %v791_v41  ;;  %vm795_vm5 = vweird.f32 %v2384_v14  ;;  %vm3005_vm6 = vcmp.eq.f32.partialorder %v798_v27, 8.507059e+37  ;;  %v801_v1 = vor.u32 1.1754944e-38, %v800_v48 }
  0xb2   : > { %v782_v32 = vsel %vm781_vm2, %v2378_v3, %v778_v61  ;;  %1186 = vmatpush.msra.mxu3 %v1041_v59  ;;  %v813_v55 = vand.u32 2147483647, %v2980_v16  ;;  %v815_v3 = vand.u32 2147483648, %v2980_v16  ;;  %vm809_vm7 = vweird.f32 %v2980_v16  ;;  %vm796_vm8 = vmor %vm794_vm4, %vm795_vm5 }
  0xb3   : > { %v787_v47 = vsel %vm784_vm3, %v786_v38, %v782_v32  ;;  %v793_v4 = vadd.f32 %v2384_v14, %v792_v33  ;;  %v828_v6 = vand.u32 2147483647, %v2985_v22  ;;  %v3016_v7 = vadd.f32 1.0, %v2386_v54 }
  0xb4   : > { %v1030_v62 = vmul.f32 %v787_v47, %v2862_v42  ;;  %v2388_v8 = vpop.eup %2387  ;;  %v830_v12 = vand.u32 2147483648, %v2985_v22  ;;  %v2223_v42 = vmul.f32 -1.442695, %v3001_v46  ;;  %v3024_v15 = vadd.f32 %v2920_v11, %v2900_v63 }
  0xb5   : > { %v3028_v18 = vadd.f32 %v2920_v11, %v2906_v2  ;;  %v797_v20 = vsel %vm796_vm8, %v2384_v14, %v793_v4  ;;  %v805_v50 = vmul.f32 %v2388_v8, %v2980_v16  ;;  %2391 = vrcp.f32 %v3016_v7 }
  0xb6   : > { %1100 = vmatpush.msra.mxu0 %v1030_v62  ;;  %v3034_v40 = vadd.f32 %v3009_v0, %v2882_v56  ;;  %v2390_v21 = vpop.eup %2389  ;;  %v802_v26 = vsel %vm3005_vm6, %v801_v1, %v797_v20  ;;  %vm3038_vm9 = vcmp.eq.f32.partialorder %v813_v55, 8.507059e+37  ;;  %v816_v27 = vor.u32 1.1754944e-38, %v815_v3 }
  0xb7   : > { %vm824_vm10 = vweird.f32 %v2985_v22  ;;  %v1031_v2 = vmul.f32 %v802_v26, %v2865_v43  ;;  %v806_v28 = vsub.f32 1.0, %v805_v50  ;;  %v820_v10 = vmul.f32 %v2390_v21, %v2985_v22 }
  0xb8   : > { %vm3045_vm11 = vcmp.eq.f32.partialorder %v828_v6, 8.507059e+37  ;;  %vm810_vm12 = vweird.f32 %v2388_v8  ;;  %v831_v56 = vor.u32 1.1754944e-38, %v830_v12  ;;  %2393 = vpow2.f32 %v2223_v42 }
  0xb9   : > { %v2224_v53 = vmul.f32 -1.442695, %v3024_v15  ;;  %1129 = vmatpush.msra.mxu1 %v1031_v2  ;;  %v807_v44 = vmul.f32 %v2388_v8, %v806_v28  ;;  %v821_v45 = vsub.f32 1.0, %v820_v10  ;;  %v2225_v14 = vmul.f32 -1.442695, %v3028_v18  ;;  %vm811_vm14 = vmor %vm809_vm7, %vm810_vm12 }
  0xba   : > { %v2214_v17 = vmul.f32 -1.442695, %v3034_v40  ;;  %vm825_vm13 = vweird.f32 %v2390_v21  ;;  %v3054_v43 = vadd.f32 %v3009_v0, %v2912_v5  ;;  %v3058_v30 = vadd.f32 %v3009_v0, %v2918_v9 }
  0xbb   : > { %2395 = vpow2.f32 %v2224_v53  ;;  %v2392_v31 = vpop.eup %2391  ;;  %v808_v60 = vadd.f32 %v2388_v8, %v807_v44  ;;  %v822_v25 = vmul.f32 %v2390_v21, %v821_v45  ;;  %v321_v48 = vmul.f32 %v2828_v23, %v2875_v52  ;;  %vm826_vm15 = vmor %vm824_vm10, %vm825_vm13 }
  0xbc   : > { %2397 = vpow2.f32 %v2225_v14  ;;  %v655_v51 = vmul.f32 %v2392_v31, %v3016_v7  ;;  %v663_v5 = vand.u32 2147483647, %v3016_v7  ;;  %v2215_v36 = vmul.f32 -1.442695, %v3054_v43 }
  0xbd   : > { %2399 = vpow2.f32 %v2214_v17  ;;  %v812_v9 = vsel %vm811_vm14, %v2388_v8, %v808_v60  ;;  %v823_v61 = vadd.f32 %v2390_v21, %v822_v25  ;;  %v3069_v59 = vadd.f32 %v3009_v0, %v321_v48 }
  0xbe   : > { %v3072_v38 = vperm.slane %v2822_v19, 4  ;;  %v2394_v23 = vpop.eup %2393  ;;  %v817_v16 = vsel %vm3038_vm9, %v816_v27, %v812_v9  ;;  %v656_v41 = vsub.f32 1.0, %v655_v51  ;;  %v665_v32 = vand.u32 2147483648, %v3016_v7 }
  0xbf   : > { %v2216_v47 = vmul.f32 -1.442695, %v3058_v30  ;;  %v1032_v33 = vmul.f32 %v817_v16, %v2886_v57  ;;  %v827_v13 = vsel %vm826_vm15, %v2390_v21, %v823_v61  ;;  %vm660_vm0 = vweird.f32 %v2392_v31 }
  0xc0   : > { %v3082_v54 = vadd.f32 1.0, %v2394_v23  ;;  %v832_v1 = vsel %vm3045_vm11, %v831_v56, %v827_v13  ;;  %v657_v55 = vmul.f32 %v2392_v31, %v656_v41  ;;  %2401 = vpow2.f32 %v2215_v36 }
  0xc1   : > { %v2396_v62 = vpop.eup %2395  ;;  %v2217_v22 = vmul.f32 -1.442695, %v3069_v59  ;;  %1158 = vmatpush.msra.mxu2 %v1032_v33  ;;  %v1033_v4 = vmul.f32 %v832_v1, %v2889_v58  ;;  %vm659_vm1 = vweird.f32 %v3016_v7  ;;  %v346_v57 = vmul.f32 %v3072_v38, %v2830_v24 }
  0xc2   : > { %v2398_v3 = vpop.eup %2397  ;;  %2403 = vrcp.f32 %v3082_v54  ;;  %v658_v8 = vadd.f32 %v2392_v31, %v657_v55  ;;  %v3092_v12 = vadd.f32 1.0, %v2396_v62  ;;  %vm661_vm2 = vmor %vm659_vm1, %vm660_vm0  ;;  %v666_v20 = vor.u32 1.1754944e-38, %v665_v32 }
  0xc3   : > { %v2400_v6 = vpop.eup %2399  ;;  %v3094_v42 = vadd.f32 1.0, %v2398_v3  ;;  %2405 = vpow2.f32 %v2216_v47  ;;  %1187 = vmatpush.msra.mxu3 %v1033_v4  ;;  %vm664_vm3 = vcmp.eq.f32.partialorder %v663_v5, 8.507059e+37  ;;  %v678_v7 = vand.u32 2147483647, %v3082_v54 }
  0xc4   : > { %v3097_v50 = vadd.f32 1.0, %v2400_v6  ;;  %2407 = vpow2.f32 %v2217_v22  ;;  %v662_v58 = vsel %vm661_vm2, %v2392_v31, %v658_v8  ;;  %v680_v26 = vand.u32 2147483648, %v3082_v54 }
  0xc5   : > { %2409 = vrcp.f32 %v3092_v12  ;;  %v667_v21 = vsel %vm664_vm3, %v666_v20, %v662_v58  ;;  %v3104_v63 = vadd.f32 %v2837_v29, %v346_v57  ;;  %vm674_vm4 = vweird.f32 %v3082_v54 }
  0xc6   : > { %2411 = vrcp.f32 %v3094_v42  ;;  %v2402_v27 = vpop.eup %2401  ;;  %v1022_v2 = vmul.f32 %v667_v21, %v2943_v35  ;;  %v693_v10 = vand.u32 2147483647, %v3092_v12  ;;  %v695_v37 = vand.u32 2147483648, %v3092_v12 }
  0xc7   : > { %2413 = vrcp.f32 %v3097_v50  ;;  %vm3112_vm5 = vcmp.eq.f32.partialorder %v678_v7, 8.507059e+37  ;;  %v708_v45 = vand.u32 2147483647, %v3094_v42  ;;  %v710_v35 = vand.u32 2147483648, %v3094_v42 }
  0xc8   : > { %v2404_v28 = vpop.eup %2403  ;;  %1101 = vmatpush.msra.mxu0 %v1022_v2  ;;  %v681_v17 = vor.u32 1.1754944e-38, %v680_v26  ;;  %vm689_vm6 = vweird.f32 %v3092_v12  ;;  %v3119_v31 = vadd.f32 1.0, %v2402_v27  ;;  %v2242_v60 = vmul.f32 -1.442695, %v3104_v63 }
  0xc9   : > { %v2406_v56 = vpop.eup %2405  ;;  %v670_v53 = vmul.f32 %v2404_v28, %v3082_v54  ;;  %vm704_vm7 = vweird.f32 %v3094_v42  ;;  %v543_v51 = vand.u32 2147483647, %v3097_v50  ;;  %v545_v5 = vand.u32 2147483648, %v3097_v50 }
  0xca   : > { %v2408_v14 = vpop.eup %2407  ;;  %vm675_vm8 = vweird.f32 %v2404_v28  ;;  %vm3126_vm9 = vcmp.eq.f32.partialorder %v693_v10, 8.507059e+37  ;;  %v696_v23 = vor.u32 1.1754944e-38, %v695_v37  ;;  %v3130_v16 = vadd.f32 1.0, %v2406_v56 }
  0xcb   : > { %v2410_v25 = vpop.eup %2409  ;;  %v671_v48 = vsub.f32 1.0, %v670_v53  ;;  %vm3133_vm10 = vcmp.eq.f32.partialorder %v708_v45, 8.507059e+37  ;;  %v711_v33 = vor.u32 1.1754944e-38, %v710_v35  ;;  %vm539_vm11 = vweird.f32 %v3097_v50  ;;  %vm676_vm14 = vmor %vm674_vm4, %vm675_vm8 }
  0xcc   : > { %v2412_v36 = vpop.eup %2411  ;;  %v685_v9 = vmul.f32 %v2410_v25, %v3092_v12  ;;  %2415 = vrcp.f32 %v3119_v31  ;;  %vm690_vm12 = vweird.f32 %v2410_v25  ;;  %v3139_v1 = vadd.f32 1.0, %v2408_v14 }
  0xcd   : > { %v672_v41 = vmul.f32 %v2404_v28, %v671_v48  ;;  %v700_v32 = vmul.f32 %v2412_v36, %v3094_v42  ;;  %v2414_v13 = vpop.eup %2413  ;;  %2417 = vpow2.f32 %v2242_v60  ;;  %vm3142_vm13 = vcmp.eq.f32.partialorder %v543_v51, 8.507059e+37  ;;  %vm691_vm3 = vmor %vm689_vm6, %vm690_vm12 }
  0xce   : > { %v686_v62 = vsub.f32 1.0, %v685_v9  ;;  %v535_v3 = vmul.f32 %v2414_v13, %v3097_v50  ;;  %v546_v57 = vor.u32 1.1754944e-38, %v545_v5  ;;  %v558_v8 = vand.u32 2147483647, %v3119_v31 }
  0xcf   : > { %v673_v55 = vadd.f32 %v2404_v28, %v672_v41  ;;  %v701_v22 = vsub.f32 1.0, %v700_v32  ;;  %v560_v20 = vand.u32 2147483648, %v3119_v31  ;;  %2419 = vrcp.f32 %v3130_v16  ;;  %v3192_v32 = vld [vmem:[%s4717_s3] sm:$0xff] }
  0xd0   : > { %v687_v6 = vmul.f32 %v2410_v25, %v686_v62  ;;  %vm705_vm15 = vweird.f32 %v2412_v36  ;;  %v536_v21 = vsub.f32 1.0, %v535_v3  ;;  %vm1074_vm0 = vcmask 261120  }
  0xd1   : > { %v677_v58 = vsel %vm676_vm14, %v2404_v28, %v673_v55  ;;  %v702_v7 = vmul.f32 %v2412_v36, %v701_v22  ;;  %vm540_vm1 = vweird.f32 %v2414_v13  ;;  %vm554_vm2 = vweird.f32 %v3119_v31  ;;  %vm706_vm4 = vmor %vm704_vm7, %vm705_vm15 }
  0xd2   : > { %v682_v26 = vsel %vm3112_vm5, %v681_v17, %v677_v58  ;;  %v688_v27 = vadd.f32 %v2410_v25, %v687_v6  ;;  %v2416_v54 = vpop.eup %2415  ;;  %v537_v28 = vmul.f32 %v2414_v13, %v536_v21  ;;  %2421 = vrcp.f32 %v3139_v1  ;;  %vm541_vm7 = vmor %vm539_vm11, %vm540_vm1 }
  0xd3   : > { %v1023_v2 = vmul.f32 %v682_v26, %v3001_v46  ;;  %v703_v10 = vadd.f32 %v2412_v36, %v702_v7  ;;  %v2418_v37 = vpop.eup %2417  ;;  %v550_v53 = vmul.f32 %v2416_v54, %v3119_v31  ;;  %vm3164_vm5 = vcmp.eq.f32.partialorder %v558_v8, 8.507059e+37 }
  0xd4   : > { %v692_v56 = vsel %vm691_vm3, %v2410_v25, %v688_v27  ;;  %v561_v46 = vor.u32 1.1754944e-38, %v560_v20  ;;  %v573_v12 = vand.u32 2147483647, %v3130_v16  ;;  %v538_v14 = vadd.f32 %v2414_v13, %v537_v28 }
  0xd5   : > { %1130 = vmatpush.msra.mxu1 %v1023_v2  ;;  %v697_v45 = vsel %vm3126_vm9, %v696_v23, %v692_v56  ;;  %v707_v35 = vsel %vm706_vm4, %v2412_v36, %v703_v10  ;;  %vm569_vm6 = vweird.f32 %v3130_v16  ;;  %v2420_v17 = vpop.eup %2419  ;;  %v551_v25 = vsub.f32 1.0, %v550_v53 }
  0xd6   : > { %v1024_v42 = vmul.f32 %v697_v45, %v3024_v15  ;;  %v712_v60 = vsel %vm3133_vm10, %v711_v33, %v707_v35  ;;  %v575_v48 = vand.u32 2147483648, %v3130_v16  ;;  %v542_v5 = vsel %vm541_vm7, %v2414_v13, %v538_v14 }
  0xd7   : > { %v1025_v51 = vmul.f32 %v712_v60, %v3028_v18  ;;  %vm555_vm8 = vweird.f32 %v2416_v54  ;;  %v565_v36 = vmul.f32 %v2420_v17, %v3130_v16  ;;  %v547_v15 = vsel %vm3142_vm13, %v546_v57, %v542_v5 }
  0xd8   : > { %1159 = vmatpush.msra.mxu2 %v1024_v42  ;;  %v552_v9 = vmul.f32 %v2416_v54, %v551_v25  ;;  %vm3183_vm9 = vcmp.eq.f32.partialorder %v573_v12, 8.507059e+37  ;;  %v588_v50 = vand.u32 2147483647, %v3139_v1  ;;  %v2422_v23 = vpop.eup %2421  ;;  %v1014_v41 = vmul.f32 %v547_v15, %v3034_v40  ;;  %vm556_vm10 = vmor %vm554_vm2, %vm555_vm8 }
  0xd9   : > { %1188 = vmatpush.msra.mxu3 %v1025_v51  ;;  %v566_v18 = vsub.f32 1.0, %v565_v36  ;;  %v3194_v47 = vadd.f32 1.0, %v2418_v37  ;;  %v3197_v33 = vperm.slane %v2822_v19, 5  ;;  %v576_v62 = vor.u32 1.1754944e-38, %v575_v48 }
  0xda   : > { %v553_v13 = vadd.f32 %v2416_v54, %v552_v9  ;;  %v580_v55 = vmul.f32 %v2422_v23, %v3139_v1  ;;  %v590_v22 = vand.u32 2147483648, %v3139_v1  ;;  %1102 = vmatpush.msra.mxu0 %v1014_v41  ;;  %vm570_vm11 = vweird.f32 %v2420_v17 }
  0xdb   : > { %v567_v40 = vmul.f32 %v2420_v17, %v566_v18  ;;  %vm584_vm12 = vweird.f32 %v3139_v1  ;;  %2423 = vrcp.f32 %v3194_v47  ;;  %vm585_vm13 = vweird.f32 %v2422_v23  ;;  %2246 = vmatmul.msk.f32.vlgmr.msra.gmra.mxu0 %vm1074_vm0, %v3192_v32  ;;  %vm571_vm15 = vmor %vm569_vm6, %vm570_vm11 }
  0xdc   : > { %v557_v3 = vsel %vm556_vm10, %v2416_v54, %v553_v13  ;;  %v581_v4 = vsub.f32 1.0, %v580_v55  ;;  %vm3206_vm14 = vcmp.eq.f32.partialorder %v588_v50, 8.507059e+37  ;;  %v347_v8 = vmul.f32 %v3197_v33, %v2830_v24  ;;  %vm586_vm1 = vmor %vm584_vm12, %vm585_vm13 }
  0xdd   : > { %v562_v31 = vsel %vm3164_vm5, %v561_v46, %v557_v3  ;;  %v568_v6 = vadd.f32 %v2420_v17, %v567_v40  ;;  %v3217_v20 = vperm.slane %v2822_v19, 6  ;;  %v591_v21 = vor.u32 1.1754944e-38, %v590_v22 }
  0xde   : > { %v1015_v58 = vmul.f32 %v562_v31, %v3054_v43  ;;  %v582_v7 = vmul.f32 %v2422_v23, %v581_v4  ;;  %v963_v26 = vand.u32 2147483647, %v3194_v47  ;;  %v3224_v54 = vadd.f32 %v2837_v29, %v347_v8 }
  0xdf   : > { %v572_v27 = vsel %vm571_vm15, %v2420_v17, %v568_v6  ;;  %v348_v2 = vmul.f32 %v3217_v20, %v2830_v24  ;;  %v3229_v10 = vperm.slane %v2822_v19, 7  ;;  %v338_v28 = vmul.f32 %v3072_v38, %v2857_v39 }
  0xe0   : > { %1131 = vmatpush.msra.mxu1 %v1015_v58  ;;  %v577_v43 = vsel %vm3183_vm9, %v576_v62, %v572_v27  ;;  %v583_v16 = vadd.f32 %v2422_v23, %v582_v7  ;;  %v339_v37 = vmul.f32 %v3197_v33, %v2857_v39  ;;  %v2243_v19 = vmul.f32 -1.442695, %v3224_v54 }
  0xe1   : > { %v2424_v56 = vpop.eup %2423  ;;  %v1016_v53 = vmul.f32 %v577_v43, %v3058_v30  ;;  %2250 = vmatmul.msk.f32.vlgmr.msra.gmra.mxu1 %vm1074_vm0, %v3192_v32  ;;  %v3245_v44 = vadd.f32 %v2837_v29, %v348_v2  ;;  %v349_v46 = vmul.f32 %v3229_v10, %v2830_v24  ;;  %v965_v30 = vand.u32 2147483648, %v3194_v47 }
  0xe2   : > { %v587_v12 = vsel %vm586_vm1, %v2422_v23, %v583_v16  ;;  %v955_v45 = vmul.f32 %v2424_v56, %v3194_v47  ;;  %v3252_v35 = vadd.f32 %v2851_v34, %v338_v28  ;;  %2425 = vpow2.f32 %v2243_v19 }
  0xe3   : > { %1160 = vmatpush.msra.mxu2 %v1016_v53  ;;  %v592_v1 = vsel %vm3206_vm14, %v591_v21, %v587_v12  ;;  %v2244_v14 = vmul.f32 -1.442695, %v3245_v44  ;;  %v3258_v17 = vadd.f32 %v2837_v29, %v349_v46  ;;  %v3265_v25 = vadd.f32 %v2851_v34, %v339_v37 }
  0xe4   : > { %v1017_v24 = vmul.f32 %v592_v1, %v3069_v59  ;;  %2254 = vmatmul.msk.f32.vlgmr.msra.gmra.mxu2 %vm1074_vm0, %v3192_v32  ;;  %v956_v42 = vsub.f32 1.0, %v955_v45  ;;  %v2234_v60 = vmul.f32 -1.442695, %v3252_v35  ;;  %v340_v51 = vmul.f32 %v3217_v20, %v2857_v39 }
  0xe5   : > { %2427 = vpow2.f32 %v2244_v14  ;;  %v2245_v48 = vmul.f32 -1.442695, %v3258_v17  ;;  %v341_v29 = vmul.f32 %v3229_v10, %v2857_v39  ;;  %vm960_vm2 = vweird.f32 %v2424_v56 }
  0xe6   : > { %1189 = vmatpush.msra.mxu3 %v1017_v24  ;;  %v957_v59 = vmul.f32 %v2424_v56, %v956_v42  ;;  %2429 = vpow2.f32 %v2234_v60  ;;  %v2235_v5 = vmul.f32 -1.442695, %v3265_v25  ;;  %v3276_v36 = vadd.f32 %v2851_v34, %v340_v51 }
  0xe7   : > { %2258 = vmatmul.msk.f32.vlgmr.msra.gmra.mxu3 %vm1074_vm0, %v3192_v32  ;;  %2431 = vpow2.f32 %v2245_v48  ;;  %v3279_v15 = vadd.f32 %v2851_v34, %v341_v29  ;;  %vm959_vm3 = vweird.f32 %v3194_v47  ;;  %vm964_vm4 = vcmp.eq.f32.partialorder %v963_v26, 8.507059e+37 }
  0xe8   : > { %v958_v9 = vadd.f32 %v2424_v56, %v957_v59  ;;  %v330_v39 = vmul.f32 %v3072_v38, %v2871_v49  ;;  %v2426_v61 = vpop.eup %2425  ;;  %vm961_vm5 = vmor %vm959_vm3, %vm960_vm2  ;;  %v966_v50 = vor.u32 1.1754944e-38, %v965_v30  ;;  %v2236_v23 = vmul.f32 -1.442695, %v3276_v36 }
  0xe9   : > { %v2237_v41 = vmul.f32 -1.442695, %v3279_v15  ;;  %v331_v18 = vmul.f32 %v3197_v33, %v2871_v49  ;;  %v3288_v34 = vadd.f32 1.0, %v2426_v61  ;;  %2433 = vpow2.f32 %v2235_v5 }
  0xea   : > { %v962_v13 = vsel %vm961_vm5, %v2424_v56, %v958_v9  ;;  %v3291_v47 = vadd.f32 %v2920_v11, %v330_v39  ;;  %2435 = vpow2.f32 %v2236_v23  ;;  %v332_v4 = vmul.f32 %v3217_v20, %v2871_v49 }
  0xeb   : > { %v2428_v62 = vpop.eup %2427  ;;  %v967_v55 = vsel %vm964_vm4, %v966_v50, %v962_v13  ;;  %2437 = vrcp.f32 %v3288_v34  ;;  %v3296_v3 = vadd.f32 %v2920_v11, %v331_v18  ;;  %v978_v7 = vand.u32 2147483647, %v3288_v34 }
  0xec   : > { %v2430_v22 = vpop.eup %2429  ;;  %v1042_v40 = vmul.f32 %v967_v55, %v3104_v63  ;;  %v3300_v31 = vadd.f32 1.0, %v2428_v62  ;;  %2439 = vpow2.f32 %v2237_v41  ;;  %v2226_v58 = vmul.f32 -1.442695, %v3291_v47 }
  0xed   : > { %v2432_v57 = vpop.eup %2431  ;;  %v3302_v6 = vadd.f32 1.0, %v2430_v22  ;;  %v3308_v63 = vadd.f32 %v2920_v11, %v332_v4  ;;  %v333_v21 = vmul.f32 %v3229_v10, %v2871_v49  ;;  %v980_v27 = vand.u32 2147483648, %v3288_v34 }
  0xee   : > { %1215 = vmatpush.msrb.mxu0 %v1042_v40  ;;  %v3304_v8 = vadd.f32 1.0, %v2432_v57  ;;  %2441 = vrcp.f32 %v3300_v31  ;;  %v3317_v2 = vmul.f32 -1.442695, %v3296_v3  ;;  %vm974_vm6 = vweird.f32 %v3288_v34 }
  0xef   : > { %v2434_v26 = vpop.eup %2433  ;;  %v995_v16 = vand.u32 2147483648, %v3300_v31  ;;  %v3323_v28 = vadd.f32 %v2920_v11, %v333_v21  ;;  %v993_v49 = vand.u32 2147483647, %v3300_v31  ;;  %v3328_v53 = vmul.f32 -1.442695, %v3308_v63 }
  0xf0   : > { %2443 = vrcp.f32 %v3304_v8  ;;  %v2436_v43 = vpop.eup %2435  ;;  %v1008_v56 = vand.u32 2147483647, %v3304_v8  ;;  %vm3331_vm7 = vcmp.eq.f32.partialorder %v978_v7, 8.507059e+37  ;;  %v1010_v45 = vand.u32 2147483648, %v3304_v8 }
  0xf1   : > { %2445 = vrcp.f32 %v3302_v6  ;;  %v2438_v37 = vpop.eup %2437  ;;  %v845_v11 = vand.u32 2147483648, %v3302_v6  ;;  %v3337_v30 = vadd.f32 1.0, %v2434_v26  ;;  %v981_v1 = vor.u32 1.1754944e-38, %v980_v27 }
  0xf2   : > { %2447 = vpow2.f32 %v2226_v58  ;;  %v2440_v19 = vpop.eup %2439  ;;  %v970_v46 = vmul.f32 %v2438_v37, %v3288_v34  ;;  %vm989_vm8 = vweird.f32 %v3300_v31  ;;  %v843_v14 = vand.u32 2147483647, %v3302_v6 }
  0xf3   : > { %v3341_v24 = vadd.f32 1.0, %v2436_v43  ;;  %vm975_vm9 = vweird.f32 %v2438_v37  ;;  %v996_v48 = vor.u32 1.1754944e-38, %v995_v16  ;;  %vm1004_vm10 = vweird.f32 %v3304_v8 }
  0xf4   : > { %v2442_v42 = vpop.eup %2441  ;;  %v971_v60 = vsub.f32 1.0, %v970_v46  ;;  %2449 = vrcp.f32 %v3337_v30  ;;  %vm3346_vm11 = vcmp.eq.f32.partialorder %v993_v49, 8.507059e+37  ;;  %vm839_vm12 = vweird.f32 %v3302_v6  ;;  %vm976_vm3 = vmor %vm974_vm6, %vm975_vm9 }
  0xf5   : > { %v985_v29 = vmul.f32 %v2442_v42, %v3300_v31  ;;  %v860_v5 = vand.u32 2147483648, %v3337_v30  ;;  %2451 = vrcp.f32 %v3341_v24  ;;  %v3353_v9 = vadd.f32 1.0, %v2440_v19 }
  0xf6   : > { %v2444_v51 = vpop.eup %2443  ;;  %v972_v61 = vmul.f32 %v2438_v37, %v971_v60  ;;  %vm3356_vm13 = vcmp.eq.f32.partialorder %v1008_v56, 8.507059e+37  ;;  %v1011_v41 = vor.u32 1.1754944e-38, %v1010_v45  ;;  %v846_v18 = vor.u32 1.1754944e-38, %v845_v11 }
  0xf7   : > { %v2446_v39 = vpop.eup %2445  ;;  %v1000_v50 = vmul.f32 %v2444_v51, %v3304_v8  ;;  %v986_v62 = vsub.f32 1.0, %v985_v29  ;;  %vm990_vm14 = vweird.f32 %v2442_v42  ;;  %vm3361_vm15 = vcmp.eq.f32.partialorder %v843_v14, 8.507059e+37 }
  0xf8   : > { %v2448_v13 = vpop.eup %2447  ;;  %v835_v55 = vmul.f32 %v2446_v39, %v3302_v6  ;;  %v858_v40 = vand.u32 2147483647, %v3337_v30  ;;  %v973_v4 = vadd.f32 %v2438_v37, %v972_v61  ;;  %vm1005_vm1 = vweird.f32 %v2444_v51  ;;  %vm991_vm9 = vmor %vm989_vm8, %vm990_vm14 }
  0xf9   : > { %v1001_v57 = vsub.f32 1.0, %v1000_v50  ;;  %vm840_vm2 = vweird.f32 %v2446_v39  ;;  %v987_v58 = vmul.f32 %v2442_v42, %v986_v62  ;;  %vm854_vm4 = vweird.f32 %v3337_v30 }
  0xfa   : > { %v836_v7 = vsub.f32 1.0, %v835_v55  ;;  %v861_v21 = vor.u32 1.1754944e-38, %v860_v5  ;;  %2453 = vrcp.f32 %v3353_v9  ;;  %v2450_v26 = vpop.eup %2449  ;;  %v977_v27 = vsel %vm976_vm3, %v2438_v37, %v973_v4  ;;  %vm841_vm8 = vmor %vm839_vm12, %vm840_vm2 }
  0xfb   : > { %v1002_v43 = vmul.f32 %v2444_v51, %v1001_v57  ;;  %vm869_vm5 = vweird.f32 %v3341_v24  ;;  %v873_v16 = vand.u32 2147483647, %v3341_v24  ;;  %v2452_v49 = vpop.eup %2451  ;;  %v982_v56 = vsel %vm3331_vm7, %v981_v1, %v977_v27  ;;  %vm1006_vm7 = vmor %vm1004_vm10, %vm1005_vm1 }
  0xfc   : > { %v988_v34 = vadd.f32 %v2442_v42, %v987_v58  ;;  %v837_v19 = vmul.f32 %v2446_v39, %v836_v7  ;;  %v850_v46 = vmul.f32 %v2450_v26, %v3337_v30  ;;  %vm3376_vm6 = vcmp.eq.f32.partialorder %v858_v40, 8.507059e+37 }
  0xfd   : > { %v1043_v11 = vmul.f32 %v982_v56, %v3224_v54  ;;  %v1003_v37 = vadd.f32 %v2444_v51, %v1002_v43  ;;  %v865_v14 = vmul.f32 %v2452_v49, %v3341_v24  ;;  %v875_v12 = vand.u32 2147483648, %v3341_v24 }
  0xfe   : > { %v992_v1 = vsel %vm991_vm9, %v2442_v42, %v988_v34  ;;  %v838_v60 = vadd.f32 %v2446_v39, %v837_v19  ;;  %v851_v29 = vsub.f32 1.0, %v850_v46  ;;  %vm855_vm3 = vweird.f32 %v2450_v26 }
  0xff   : > { %1244 = vmatpush.msrb.mxu1 %v1043_v11  ;;  %v997_v54 = vsel %vm3346_vm11, %v996_v48, %v992_v1  ;;  %v1007_v5 = vsel %vm1006_vm7, %v2444_v51, %v1003_v37  ;;  %v866_v31 = vsub.f32 1.0, %v865_v14  ;;  %vm870_vm14 = vweird.f32 %v2452_v49  ;;  %vm856_vm11 = vmor %vm854_vm4, %vm855_vm3 }
 0x100   : > { %v2454_v61 = vpop.eup %2453  ;;  %v1044_v42 = vmul.f32 %v997_v54, %v3245_v44  ;;  %v1012_v8 = vsel %vm3356_vm13, %v1011_v41, %v1007_v5  ;;  %v842_v50 = vsel %vm841_vm8, %v2446_v39, %v838_v60  ;;  %v852_v62 = vmul.f32 %v2450_v26, %v851_v29  ;;  %vm871_vm12 = vmor %vm869_vm5, %vm870_vm14 }
 0x101   : > { %v1045_v55 = vmul.f32 %v1012_v8, %v3258_v17  ;;  %v847_v48 = vsel %vm3361_vm15, %v846_v18, %v842_v50  ;;  %v867_v51 = vmul.f32 %v2452_v49, %v866_v31  ;;  %v880_v59 = vmul.f32 %v2454_v61, %v3353_v9 }
 0x102   : > { %1273 = vmatpush.msrb.mxu2 %v1044_v42  ;;  %v1034_v6 = vmul.f32 %v847_v48, %v3252_v35  ;;  %v853_v40 = vadd.f32 %v2450_v26, %v852_v62  ;;  %vm3402_vm10 = vcmp.eq.f32.partialorder %v873_v16, 8.507059e+37  ;;  %v876_v44 = vor.u32 1.1754944e-38, %v875_v12 }
 0x103   : > { %1302 = vmatpush.msrb.mxu3 %v1045_v55  ;;  %v868_v17 = vadd.f32 %v2452_v49, %v867_v51  ;;  %v881_v39 = vsub.f32 1.0, %v880_v59  ;;  %v890_v23 = vand.u32 2147483648, %v3353_v9  ;;  %v3410_v41 = vadd.f32 1.0, %v2448_v13 }
 0x104   : > { %1216 = vmatpush.msrb.mxu0 %v1034_v6  ;;  %v857_v18 = vsel %vm856_vm11, %v2450_v26, %v853_v40  ;;  %vm885_vm13 = vweird.f32 %v2454_v61  ;;  %v888_v35 = vand.u32 2147483647, %v3353_v9  ;;  %2455 = vpow2.f32 %v3317_v2  ;;  %v3476_v40 = vld [vmem:[%s4717_s3 + $0x8] sm:$0xff] }
 0x105   : > { %v862_v30 = vsel %vm3376_vm6, %v861_v21, %v857_v18  ;;  %v872_v22 = vsel %vm871_vm12, %v2452_v49, %v868_v17  ;;  %v882_v57 = vmul.f32 %v2454_v61, %v881_v39  ;;  %v2229_v58 = vmul.f32 -1.442695, %v3323_v28  ;;  %2247 = vmatmul.msk.f32.gmra.mxu0 %vm1074_vm0, %v3476_v40  ;;  %2251 = vmatmul.msk.f32.gmra.mxu1 %vm1074_vm0, %v3476_v40 }
 0x106   : > { %v1035_v13 = vmul.f32 %v862_v30, %v3265_v25  ;;  %v877_v7 = vsel %vm3402_vm10, %v876_v44, %v872_v22  ;;  %2457 = vrcp.f32 %v3410_v41  ;;  %vm884_vm15 = vweird.f32 %v3353_v9  ;;  %2255 = vmatmul.msk.f32.gmra.mxu2 %vm1074_vm0, %v3476_v40  ;;  %2259 = vmatmul.msk.f32.gmra.mxu3 %vm1074_vm0, %v3476_v40 }
 0x107   : > { %v1036_v24 = vmul.f32 %v877_v7, %v3276_v36  ;;  %v883_v26 = vadd.f32 %v2454_v61, %v882_v57  ;;  %v891_v2 = vor.u32 1.1754944e-38, %v890_v23  ;;  %vm886_vm1 = vmor %vm884_vm15, %vm885_vm13  ;;  %2459 = vpow2.f32 %v3328_v53 }
 0x108   : > { %1245 = vmatpush.msrb.mxu1 %v1035_v13  ;;  %v322_v21 = vmul.f32 %v3072_v38, %v2875_v52  ;;  %v323_v25 = vmul.f32 %v3197_v33, %v2875_v52  ;;  %v324_v27 = vmul.f32 %v3217_v20, %v2875_v52  ;;  %vm889_vm2 = vcmp.eq.f32.partialorder %v888_v35, 8.507059e+37 }
 0x109   : > { %1274 = vmatpush.msrb.mxu2 %v1036_v24  ;;  %v887_v36 = vsel %vm886_vm1, %v2454_v61, %v883_v26  ;;  %2461 = vpow2.f32 %v2229_v58  ;;  %v325_v45 = vmul.f32 %v3229_v10, %v2875_v52  ;;  %v725_v1 = vand.u32 2147483648, %v3410_v41 }
 0x10a   : > { %v2456_v9 = vpop.eup %2455  ;;  %v892_v43 = vsel %vm889_vm2, %v891_v2, %v887_v36  ;;  %v3435_v16 = vadd.f32 %v3009_v0, %v322_v21  ;;  %v3438_v53 = vadd.f32 %v3009_v0, %v323_v25  ;;  %v3441_v38 = vadd.f32 %v3009_v0, %v324_v27  ;;  %v3513_v27 = vld [vmem:[%s4717_s3 + $0x10] sm:$0xff] }
 0x10b   : > { %v1037_v33 = vmul.f32 %v892_v43, %v3279_v15  ;;  %v3444_v49 = vadd.f32 1.0, %v2456_v9  ;;  %v3456_v12 = vadd.f32 %v3009_v0, %v325_v45  ;;  %v723_v54 = vand.u32 2147483647, %v3410_v41 }
 0x10c   : > { %v2458_v20 = vpop.eup %2457  ;;  %v2218_v56 = vmul.f32 -1.442695, %v3435_v16  ;;  %v2219_v34 = vmul.f32 -1.442695, %v3438_v53  ;;  %v2220_v19 = vmul.f32 -1.442695, %v3441_v38  ;;  %vm719_vm5 = vweird.f32 %v3410_v41 }
 0x10d   : > { %1303 = vmatpush.msrb.mxu3 %v1037_v33  ;;  %v715_v46 = vmul.f32 %v2458_v20, %v3410_v41  ;;  %2463 = vrcp.f32 %v3444_v49  ;;  %v2460_v11 = vpop.eup %2459  ;;  %vm720_vm4 = vweird.f32 %v2458_v20  ;;  %v738_v0 = vand.u32 2147483647, %v3444_v49  ;;  %2248 = vmatmul.msk.f32.gmra.mxu0 %vm1074_vm0, %v3513_v27 }
 0x10e   : > { %2465 = vpow2.f32 %v2218_v56  ;;  %v3453_v14 = vadd.f32 1.0, %v2460_v11  ;;  %v2221_v5 = vmul.f32 -1.442695, %v3456_v12  ;;  %vm721_vm6 = vmor %vm719_vm5, %vm720_vm4  ;;  %v726_v61 = vor.u32 1.1754944e-38, %v725_v1  ;;  %2252 = vmatmul.msk.f32.gmra.mxu1 %vm1074_vm0, %v3513_v27  ;;  %2256 = vmatmul.msk.f32.gmra.mxu2 %vm1074_vm0, %v3513_v27 }
 0x10f   : > { %v2462_v15 = vpop.eup %2461  ;;  %v716_v37 = vsub.f32 1.0, %v715_v46  ;;  %2467 = vpow2.f32 %v2219_v34  ;;  %vm724_vm9 = vcmp.eq.f32.partialorder %v723_v54, 8.507059e+37  ;;  %v740_v62 = vand.u32 2147483648, %v3444_v49  ;;  %2260 = vmatmul.msk.f32.gmra.mxu3 %vm1074_vm0, %v3513_v27 }
 0x110   : > { %v3459_v60 = vadd.f32 1.0, %v2462_v15  ;;  %2469 = vpow2.f32 %v2220_v19  ;;  %vm734_vm7 = vweird.f32 %v3444_v49  ;;  %vm3480_vm3 = vcmp.eq.f32.partialorder %v738_v0, 8.507059e+37 }
 0x111   : > { %v717_v29 = vmul.f32 %v2458_v20, %v716_v37  ;;  %2471 = vrcp.f32 %v3453_v14  ;;  %v741_v18 = vor.u32 1.1754944e-38, %v740_v62  ;;  %v755_v35 = vand.u32 2147483648, %v3453_v14 }
 0x112   : > { %2473 = vrcp.f32 %v3459_v60  ;;  %vm749_vm14 = vweird.f32 %v3453_v14  ;;  %v768_v58 = vand.u32 2147483647, %v3459_v60  ;;  %vm764_vm11 = vweird.f32 %v3459_v60 }
 0x113   : > { %v2464_v52 = vpop.eup %2463  ;;  %v718_v10 = vadd.f32 %v2458_v20, %v717_v29  ;;  %2475 = vpow2.f32 %v2221_v5  ;;  %v770_v7 = vand.u32 2147483648, %v3459_v60  ;;  %v756_v43 = vor.u32 1.1754944e-38, %v755_v35 }
 0x114   : > { %v2466_v31 = vpop.eup %2465  ;;  %v730_v42 = vmul.f32 %v2464_v52, %v3444_v49  ;;  %vm735_vm8 = vweird.f32 %v2464_v52  ;;  %vm3518_vm1 = vcmp.eq.f32.partialorder %v768_v58, 8.507059e+37 }
 0x115   : > { %v2468_v8 = vpop.eup %2467  ;;  %v722_v50 = vsel %vm721_vm6, %v2458_v20, %v718_v10  ;;  %v3469_v55 = vadd.f32 1.0, %v2466_v31  ;;  %vm736_vm10 = vmor %vm734_vm7, %vm735_vm8  ;;  %v771_v45 = vor.u32 1.1754944e-38, %v770_v7 }
 0x116   : > { %v2470_v48 = vpop.eup %2469  ;;  %v727_v51 = vsel %vm724_vm9, %v726_v61, %v722_v50  ;;  %v731_v59 = vsub.f32 1.0, %v730_v42  ;;  %v3471_v6 = vadd.f32 1.0, %v2468_v8 }
 0x117   : > { %v2472_v4 = vpop.eup %2471  ;;  %v1026_v44 = vmul.f32 %v727_v51, %v3291_v47  ;;  %2477 = vrcp.f32 %v3469_v55  ;;  %v753_v47 = vand.u32 2147483647, %v3453_v14  ;;  %v3504_v24 = vadd.f32 1.0, %v2470_v48 }
 0x118   : > { %v2474_v39 = vpop.eup %2473  ;;  %v732_v23 = vmul.f32 %v2464_v52, %v731_v59  ;;  %v745_v41 = vmul.f32 %v2472_v4, %v3453_v14  ;;  %2479 = vrcp.f32 %v3471_v6  ;;  %vm750_vm12 = vweird.f32 %v2472_v4 }
 0x119   : > { %1217 = vmatpush.msrb.mxu0 %v1026_v44  ;;  %v760_v30 = vmul.f32 %v2474_v39, %v3459_v60  ;;  %v2476_v26 = vpop.eup %2475  ;;  %vm3506_vm13 = vcmp.eq.f32.partialorder %v753_v47, 8.507059e+37  ;;  %vm765_vm15 = vweird.f32 %v2474_v39  ;;  %vm751_vm2 = vmor %vm749_vm14, %vm750_vm12  ;;  %2481 = vrcp.f32 %v3504_v24 }
 0x11a   : > { %v733_v22 = vadd.f32 %v2464_v52, %v732_v23  ;;  %v746_v57 = vsub.f32 1.0, %v745_v41  ;;  %v3526_v11 = vadd.f32 1.0, %v2476_v26  ;;  %vm766_vm4 = vmor %vm764_vm11, %vm765_vm15  ;;  %v603_v37 = vand.u32 2147483647, %v3469_v55 }
 0x11b   : > { %v761_v13 = vsub.f32 1.0, %v760_v30  ;;  %v605_v54 = vand.u32 2147483648, %v3469_v55  ;;  %vm599_vm6 = vweird.f32 %v3469_v55  ;;  %v620_v31 = vand.u32 2147483648, %v3471_v6 }
 0x11c   : > { %v737_v2 = vsel %vm736_vm10, %v2464_v52, %v733_v22  ;;  %v747_v21 = vmul.f32 %v2472_v4, %v746_v57  ;;  %2483 = vrcp.f32 %v3526_v11  ;;  %v618_v8 = vand.u32 2147483647, %v3471_v6 }
 0x11d   : > { %v2478_v36 = vpop.eup %2477  ;;  %v742_v9 = vsel %vm3480_vm3, %v741_v18, %v737_v2  ;;  %v762_v33 = vmul.f32 %v2474_v39, %v761_v13  ;;  %vm604_vm3 = vcmp.eq.f32.partialorder %v603_v37, 8.507059e+37  ;;  %vm614_vm8 = vweird.f32 %v3471_v6 }
 0x11e   : > { %v1027_v49 = vmul.f32 %v742_v9, %v3296_v3  ;;  %v748_v20 = vadd.f32 %v2472_v4, %v747_v21  ;;  %v595_v34 = vmul.f32 %v2478_v36, %v3469_v55  ;;  %v2480_v19 = vpop.eup %2479  ;;  %vm600_vm5 = vweird.f32 %v2478_v36 }
 0x11f   : > { %v763_v46 = vadd.f32 %v2474_v39, %v762_v33  ;;  %v610_v14 = vmul.f32 %v2480_v19, %v3471_v6  ;;  %vm615_vm9 = vweird.f32 %v2480_v19  ;;  %v2482_v50 = vpop.eup %2481  ;;  %vm601_vm7 = vmor %vm599_vm6, %vm600_vm5  ;;  %v621_v59 = vor.u32 1.1754944e-38, %v620_v31 }
 0x120   : > { %1246 = vmatpush.msrb.mxu1 %v1027_v49  ;;  %v752_v3 = vsel %vm751_vm2, %v2472_v4, %v748_v20  ;;  %v596_v15 = vsub.f32 1.0, %v595_v34  ;;  %v625_v48 = vmul.f32 %v2482_v50, %v3504_v24  ;;  %vm616_vm14 = vmor %vm614_vm8, %vm615_vm9  ;;  %vm619_vm10 = vcmp.eq.f32.partialorder %v618_v8, 8.507059e+37 }
 0x121   : > { %v757_v1 = vsel %vm3506_vm13, %v756_v43, %v752_v3  ;;  %v767_v29 = vsel %vm766_vm4, %v2474_v39, %v763_v46  ;;  %v611_v0 = vsub.f32 1.0, %v610_v14  ;;  %v633_v23 = vand.u32 2147483647, %v3504_v24 }
 0x122   : > { %v1028_v60 = vmul.f32 %v757_v1, %v3308_v63  ;;  %v772_v52 = vsel %vm3518_vm1, %v771_v45, %v767_v29  ;;  %v597_v10 = vmul.f32 %v2478_v36, %v596_v15  ;;  %v3555_v63 = vld [vmem:[%s4717_s3 + $0x18] sm:$0xff]  ;;  %v626_v17 = vsub.f32 1.0, %v625_v48  ;;  %v2484_v6 = vpop.eup %2483  ;;  %v3638_v29 = vpop.permute.xlu0 %1061 }
 0x123   : > { %v1029_v5 = vmul.f32 %v772_v52, %v3323_v28  ;;  %v612_v42 = vmul.f32 %v2480_v19, %v611_v0  ;;  %v606_v28 = vor.u32 1.1754944e-38, %v605_v54  ;;  %2249 = vmatmul.msk.f32.gmra.mxu0 %vm1074_vm0, %v3555_v63  ;;  %2253 = vmatmul.msk.f32.gmra.mxu1 %vm1074_vm0, %v3555_v63  ;;  %v635_v41 = vand.u32 2147483648, %v3504_v24 }
 0x124   : > { %1275 = vmatpush.msrb.mxu2 %v1028_v60  ;;  %v598_v61 = vadd.f32 %v2478_v36, %v597_v10  ;;  %2261 = vmatmul.msk.f32.gmra.mxu3 %vm1074_vm0, %v3555_v63  ;;  %v627_v18 = vmul.f32 %v2482_v50, %v626_v17  ;;  %vm630_vm11 = vweird.f32 %v2482_v50  ;;  %vm629_vm12 = vweird.f32 %v3504_v24 }
 0x125   : > { %1304 = vmatpush.msrb.mxu3 %v1029_v5  ;;  %v613_v55 = vadd.f32 %v2480_v19, %v612_v42  ;;  %2257 = vmatmul.msk.f32.gmra.mxu2 %vm1074_vm0, %v3555_v63  ;;  %vm631_vm13 = vmor %vm629_vm12, %vm630_vm11  ;;  %vm634_vm15 = vcmp.eq.f32.partialorder %v633_v23, 8.507059e+37  ;;  %v636_v22 = vor.u32 1.1754944e-38, %v635_v41  ;;  %v650_v57 = vand.u32 2147483648, %v3526_v11 }
 0x126   : > { %v602_v62 = vsel %vm601_vm7, %v2478_v36, %v598_v61  ;;  %v628_v35 = vadd.f32 %v2482_v50, %v627_v18  ;;  %vm645_vm1 = vweird.f32 %v2484_v6  ;;  %v648_v7 = vand.u32 2147483647, %v3526_v11 }
 0x127   : > { %v607_v51 = vsel %vm604_vm3, %v606_v28, %v602_v62  ;;  %v617_v44 = vsel %vm616_vm14, %v2480_v19, %v613_v55  ;;  %vm644_vm2 = vweird.f32 %v3526_v11  ;;  %v651_v2 = vor.u32 1.1754944e-38, %v650_v57 }
 0x128   : > { %v1018_v4 = vmul.f32 %v607_v51, %v3435_v16  ;;  %v622_v39 = vsel %vm619_vm10, %v621_v59, %v617_v44  ;;  %v640_v16 = vmul.f32 %v2484_v6, %v3526_v11  ;;  %v632_v58 = vsel %vm631_vm13, %v2482_v50, %v628_v35  ;;  %vm646_vm4 = vmor %vm644_vm2, %vm645_vm1 }
 0x129   : > { %v1019_v47 = vmul.f32 %v622_v39, %v3438_v53  ;;  %v637_v53 = vsel %vm634_vm15, %v636_v22, %v632_v58  ;;  %vm649_vm5 = vcmp.eq.f32.partialorder %v648_v7, 8.507059e+37 }
 0x12a   : > { %1218 = vmatpush.msrb.mxu0 %v1018_v4  ;;  %v641_v30 = vsub.f32 1.0, %v640_v16  ;;  %v1020_v24 = vmul.f32 %v637_v53, %v3441_v38 }
 0x12b   : > { %1247 = vmatpush.msrb.mxu1 %v1019_v47  ;;  %2262 = vmatmul.msk.f32.vlgmr.msrb.gmra.mxu0 %vm1074_vm0, %v3192_v32 }
 0x12c   : > { %v642_v13 = vmul.f32 %v2484_v6, %v641_v30  ;;  %2266 = vmatmul.msk.f32.vlgmr.msrb.gmra.mxu1 %vm1074_vm0, %v3192_v32  ;;  %1276 = vmatpush.msrb.mxu2 %v1020_v24 }
 0x12d   : > { %2270 = vmatmul.msk.f32.vlgmr.msrb.gmra.mxu2 %vm1074_vm0, %v3192_v32 }
 0x12e   : > { %v643_v26 = vadd.f32 %v2484_v6, %v642_v13 }
 0x130   : > { %v647_v21 = vsel %vm646_vm4, %v2484_v6, %v643_v26  ;;  %v3675_v6 = vpop.permute.xlu1 %1066 }
 0x131   : > { %v652_v25 = vsel %vm649_vm5, %v651_v2, %v647_v21 }
 0x132   : > { %v1021_v36 = vmul.f32 %v652_v25, %v3456_v12  ;;  %v3611_v12 = vpop.permute.xlu2 %1056 }
 0x133   : > { %2263 = vmatmul.msk.f32.gmra.mxu0 %vm1074_vm0, %v3476_v40 }
 0x134   : > { %1305 = vmatpush.msrb.mxu3 %v1021_v36  ;;  %2267 = vmatmul.msk.f32.gmra.mxu1 %vm1074_vm0, %v3476_v40 }
 0x135   : > { %2274 = vmatmul.msk.f32.vlgmr.msrb.gmra.mxu3 %vm1074_vm0, %v3192_v32  ;;  %2271 = vmatmul.msk.f32.gmra.mxu2 %vm1074_vm0, %v3476_v40 }
 0x13b   : > { %2264 = vmatmul.msk.f32.gmra.mxu0 %vm1074_vm0, %v3513_v27 }
 0x13c   : > { %2268 = vmatmul.msk.f32.gmra.mxu1 %vm1074_vm0, %v3513_v27 }
 0x13d   : > { %2275 = vmatmul.msk.f32.gmra.mxu3 %vm1074_vm0, %v3476_v40  ;;  %2272 = vmatmul.msk.f32.gmra.mxu2 %vm1074_vm0, %v3513_v27 }
 0x143   : > { %2265 = vmatmul.msk.f32.gmra.mxu0 %vm1074_vm0, %v3555_v63 }
 0x144   : > { %2269 = vmatmul.msk.f32.gmra.mxu1 %vm1074_vm0, %v3555_v63 }
 0x145   : > { %2276 = vmatmul.msk.f32.gmra.mxu3 %vm1074_vm0, %v3513_v27  ;;  %2273 = vmatmul.msk.f32.gmra.mxu2 %vm1074_vm0, %v3555_v63 }
 0x14d   : > { %2277 = vmatmul.msk.f32.gmra.mxu3 %vm1074_vm0, %v3555_v63 }
 0x158   : > { %v1104_v32 = vpop.f32.mrf.mxu0 }
 0x159   : > { %v3614_v9 = vadd.f32 %v1104_v32, %v3611_v12 }
 0x15b   : > { %v2278_v20 = vmul.f32 -1.442695, %v3614_v9 }
 0x15d   : > { %2485 = vpow2.f32 %v2278_v20 }
 0x15e   : > { %v1133_v38 = vpop.f32.mrf.mxu1 }
 0x15f   : > { %v3617_v43 = vadd.f32 %v1133_v38, %v3611_v12 }
 0x161   : > { %v2279_v56 = vmul.f32 -1.442695, %v3617_v43 }
 0x163   : > { %2487 = vpow2.f32 %v2279_v56  ;;  %v2486_v46 = vpop.eup %2485 }
 0x164   : > { %v3629_v15 = vadd.f32 1.0, %v2486_v46 }
 0x166   : > { %v1456_v22 = vand.u32 2147483647, %v3629_v15  ;;  %v1458_v58 = vand.u32 2147483648, %v3629_v15  ;;  %vm1452_vm0 = vweird.f32 %v3629_v15 }
 0x167   : > { %v1162_v40 = vpop.f32.mrf.mxu2 }
 0x168   : > { %v3620_v33 = vadd.f32 %v1162_v40, %v3611_v12  ;;  %vm3694_vm9 = vcmp.eq.f32.partialorder %v1456_v22, 8.507059e+37  ;;  %v1459_v36 = vor.u32 1.1754944e-38, %v1458_v58 }
 0x169   : > { %v2488_v45 = vpop.eup %2487 }
 0x16a   : > { %v1191_v27 = vpop.f32.mrf.mxu3  ;;  %v2280_v34 = vmul.f32 -1.442695, %v3620_v33  ;;  %v3631_v37 = vadd.f32 1.0, %v2488_v45 }
 0x16b   : > { %v3623_v49 = vadd.f32 %v1191_v27, %v3611_v12 }
 0x16c   : > { %2489 = vpow2.f32 %v2280_v34  ;;  %v1471_v32 = vand.u32 2147483647, %v3631_v37  ;;  %v1473_v38 = vand.u32 2147483648, %v3631_v37  ;;  %vm1467_vm14 = vweird.f32 %v3631_v37 }
 0x16d   : > { %v2281_v19 = vmul.f32 -1.442695, %v3623_v49 }
 0x16e   : > { %vm3728_vm13 = vcmp.eq.f32.partialorder %v1471_v32, 8.507059e+37  ;;  %v3790_v32 = vpop.permute.xlu0 %1965 }
 0x16f   : > { %2491 = vpow2.f32 %v2281_v19 }
 0x170   : > { %2493 = vrcp.f32 %v3629_v15 }
 0x171   : > { %2495 = vrcp.f32 %v3631_v37 }
 0x172   : > { %v2490_v11 = vpop.eup %2489 }
 0x173   : > { %v3633_v14 = vadd.f32 1.0, %v2490_v11 }
 0x175   : > { %v2492_v3 = vpop.eup %2491  ;;  %2497 = vrcp.f32 %v3633_v14  ;;  %vm1482_vm12 = vweird.f32 %v3633_v14  ;;  %v1488_v11 = vand.u32 2147483648, %v3633_v14 }
 0x176   : > { %v3635_v1 = vadd.f32 1.0, %v2492_v3  ;;  %v3650_v5 = vpop.eup %2493 }
 0x177   : > { %v3652_v31 = vpop.eup %2495  ;;  %v1448_v50 = vmul.f32 %v3650_v5, %v3629_v15  ;;  %vm1453_vm6 = vweird.f32 %v3650_v5 }
 0x178   : > { %2499 = vrcp.f32 %v3635_v1  ;;  %v1463_v28 = vmul.f32 %v3652_v31, %v3631_v37  ;;  %vm1468_vm7 = vweird.f32 %v3652_v31  ;;  %vm3712_vm8 = vmor %vm1452_vm0, %vm1453_vm6  ;;  %v1503_v3 = vand.u32 2147483648, %v3635_v1 }
 0x179   : > { %v1449_v44 = vsub.f32 1.0, %v1448_v50  ;;  %vm3720_vm11 = vmor %vm1467_vm14, %vm1468_vm7  ;;  %vm1497_vm1 = vweird.f32 %v3635_v1 }
 0x17a   : > { %v1464_v39 = vsub.f32 1.0, %v1463_v28 }
 0x17b   : > { %v3655_v42 = vpop.eup %2497  ;;  %v1450_v57 = vmul.f32 %v3650_v5, %v1449_v44 }
 0x17c   : > { %v1478_v51 = vmul.f32 %v3655_v42, %v3633_v14  ;;  %v1465_v13 = vmul.f32 %v3652_v31, %v1464_v39  ;;  %vm1483_vm3 = vweird.f32 %v3655_v42  ;;  %v1489_v39 = vor.u32 1.1754944e-38, %v1488_v11  ;;  %v3810_v11 = vpop.permute.xlu2 %1071 }
 0x17d   : > { %v1451_v40 = vadd.f32 %v3650_v5, %v1450_v57  ;;  %vm3734_vm15 = vmor %vm1482_vm12, %vm1483_vm3 }
 0x17e   : > { %v3657_v63 = vpop.eup %2499  ;;  %v1479_v18 = vsub.f32 1.0, %v1478_v51  ;;  %v1466_v27 = vadd.f32 %v3652_v31, %v1465_v13 }
 0x17f   : > { %v1493_v59 = vmul.f32 %v3657_v63, %v3635_v1  ;;  %vm1498_vm10 = vweird.f32 %v3657_v63  ;;  %v1455_v28 = vsel %vm3712_vm8, %v3650_v5, %v1451_v40 }
 0x180   : > { %v1480_v26 = vmul.f32 %v3655_v42, %v1479_v18  ;;  %vm3749_vm2 = vmor %vm1497_vm1, %vm1498_vm10 }
 0x181   : > { %v1494_v16 = vsub.f32 1.0, %v1493_v59 }
 0x182   : > { %v1107_v54 = vpop.f32.mrf.mxu0  ;;  %v1136_v10 = vpop.f32.mrf.mxu1  ;;  %v1481_v34 = vadd.f32 %v3655_v42, %v1480_v26 }
 0x183   : > { %v3643_v60 = vadd.f32 %v1107_v54, %v3638_v29  ;;  %v3648_v0 = vadd.f32 %v1136_v10, %v3638_v29  ;;  %v1495_v2 = vmul.f32 %v3657_v63, %v1494_v16 }
 0x185   : > { %v2286_v52 = vmul.f32 -1.442695, %v3643_v60  ;;  %v2287_v61 = vmul.f32 -1.442695, %v3648_v0  ;;  %v1496_v19 = vadd.f32 %v3657_v63, %v1495_v2 }
 0x187   : > { %2501 = vpow2.f32 %v2286_v52  ;;  %v1500_v5 = vsel %vm3749_vm2, %v3657_v63, %v1496_v19 }
 0x188   : > { %2503 = vpow2.f32 %v2287_v61  ;;  %v1486_v61 = vand.u32 2147483647, %v3633_v14 }
 0x189   : > { %v1165_v8 = vpop.f32.mrf.mxu2  ;;  %v1194_v55 = vpop.f32.mrf.mxu3 }
 0x18a   : > { %v3664_v62 = vadd.f32 %v1165_v8, %v3638_v29  ;;  %v3671_v4 = vadd.f32 %v1194_v55, %v3638_v29  ;;  %v1110_v41 = vpop.f32.mrf.mxu0  ;;  %v1501_v8 = vand.u32 2147483647, %v3635_v1  ;;  %v1470_v55 = vsel %vm3720_vm11, %v3652_v31, %v1466_v27 }
 0x18b   : > { %v3680_v30 = vadd.f32 %v1110_v41, %v3675_v6  ;;  %v1139_v24 = vpop.f32.mrf.mxu1  ;;  %v1485_v1 = vsel %vm3734_vm15, %v3655_v42, %v1481_v34  ;;  %v1460_v42 = vsel %vm3694_vm9, %v1459_v36, %v1455_v28  ;;  %vm1487_vm4 = vcmp.eq.f32.partialorder %v1486_v61, 8.507059e+37 }
 0x18c   : > { %v2288_v23 = vmul.f32 -1.442695, %v3664_v62  ;;  %v2289_v35 = vmul.f32 -1.442695, %v3671_v4  ;;  %v3699_v25 = vadd.f32 %v1139_v24, %v3675_v6  ;;  %vm1502_vm5 = vcmp.eq.f32.partialorder %v1501_v8, 8.507059e+37 }
 0x18d   : > { %v2502_v48 = vpop.eup %2501  ;;  %v2294_v53 = vmul.f32 -1.442695, %v3680_v30  ;;  %v1490_v16 = vsel %vm1487_vm4, %v1489_v39, %v1485_v1 }
 0x18e   : > { %v3673_v17 = vadd.f32 1.0, %v2502_v48  ;;  %v2504_v47 = vpop.eup %2503  ;;  %v2295_v15 = vmul.f32 -1.442695, %v3699_v25  ;;  %v1474_v48 = vor.u32 1.1754944e-38, %v1473_v38  ;;  %v1929_v26 = vmul.f32 %v1490_v16, %v3620_v33 }
 0x18f   : > { %v3687_v7 = vadd.f32 1.0, %v2504_v47 }
 0x190   : > { %2505 = vrcp.f32 %v3673_v17  ;;  %v1475_v63 = vsel %vm3728_vm13, %v1474_v48, %v1470_v55  ;;  %v1576_v27 = vand.u32 2147483647, %v3673_v17  ;;  %v3804_v19 = vmul.f32 %v3790_v32, %v1929_v26 }
 0x191   : > { %2507 = vpow2.f32 %v2288_v23  ;;  %v1168_v37 = vpop.f32.mrf.mxu2  ;;  %v1504_v23 = vor.u32 1.1754944e-38, %v1503_v3  ;;  %v1928_v24 = vmul.f32 %v1475_v63, %v3617_v43  ;;  %vm1572_vm0 = vweird.f32 %v3673_v17 }
 0x192   : > { %2509 = vpow2.f32 %v2289_v35  ;;  %v3764_v31 = vadd.f32 %v1168_v37, %v3675_v6  ;;  %v1197_v47 = vpop.f32.mrf.mxu3  ;;  %vm3827_vm9 = vcmp.eq.f32.partialorder %v1576_v27, 8.507059e+37  ;;  %v1591_v55 = vand.u32 2147483647, %v3687_v7 }
 0x193   : > { %2511 = vpow2.f32 %v2294_v53  ;;  %v1505_v35 = vsel %vm1502_vm5, %v1504_v23, %v1500_v5  ;;  %v3781_v13 = vadd.f32 %v1197_v47, %v3675_v6  ;;  %v1927_v53 = vmul.f32 %v1460_v42, %v3614_v9 }
 0x194   : > { %2513 = vrcp.f32 %v3687_v7  ;;  %v2296_v58 = vmul.f32 -1.442695, %v3764_v31  ;;  %v1930_v21 = vmul.f32 %v1505_v35, %v3623_v49  ;;  %v1578_v9 = vand.u32 2147483648, %v3673_v17 }
 0x195   : > { %2515 = vpow2.f32 %v2295_v15  ;;  %v2297_v40 = vmul.f32 -1.442695, %v3781_v13  ;;  %v3798_v34 = vmul.f32 %v3790_v32, %v1927_v53  ;;  %v3801_v49 = vmul.f32 %v3790_v32, %v1928_v24 }
 0x196   : > { %v3708_v20 = vpop.eup %2505  ;;  %v3813_v3 = vmul.f32 %v3790_v32, %v1930_v21  ;;  %v1579_v28 = vor.u32 1.1754944e-38, %v1578_v9  ;;  %vm1587_vm3 = vweird.f32 %v3687_v7  ;;  %v1593_v39 = vand.u32 2147483648, %v3687_v7 }
 0x197   : > { %v2508_v46 = vpop.eup %2507  ;;  %v1568_v14 = vmul.f32 %v3708_v20, %v3673_v17  ;;  %vm1573_vm6 = vweird.f32 %v3708_v20  ;;  %vm3861_vm14 = vcmp.eq.f32.partialorder %v1591_v55, 8.507059e+37 }
 0x198   : > { %v2510_v54 = vpop.eup %2509  ;;  %v3761_v59 = vadd.f32 1.0, %v2508_v46  ;;  %vm3845_vm7 = vmor %vm1572_vm0, %vm1573_vm6 }
 0x199   : > { %v2512_v50 = vpop.eup %2511  ;;  %v3768_v41 = vadd.f32 1.0, %v2510_v54  ;;  %v1569_v22 = vsub.f32 1.0, %v1568_v14 }
 0x19a   : > { %v3766_v44 = vpop.eup %2513  ;;  %v3772_v18 = vadd.f32 1.0, %v2512_v50  ;;  %2517 = vrcp.f32 %v3761_v59  ;;  %vm1602_vm11 = vweird.f32 %v3761_v59 }
 0x19b   : > { %v1583_v57 = vmul.f32 %v3766_v44, %v3687_v7  ;;  %2519 = vrcp.f32 %v3768_v41  ;;  %v2516_v2 = vpop.eup %2515  ;;  %v1570_v36 = vmul.f32 %v3708_v20, %v1569_v22  ;;  %vm1588_vm8 = vweird.f32 %v3766_v44 }
 0x19c   : > { %2521 = vrcp.f32 %v3772_v18  ;;  %v3806_v46 = vadd.f32 1.0, %v2516_v2  ;;  %v1606_v22 = vand.u32 2147483647, %v3761_v59  ;;  %vm3873_vm10 = vmor %vm1587_vm3, %vm1588_vm8  ;;  %vm1617_vm12 = vweird.f32 %v3768_v41 }
 0x19d   : > { %2523 = vpow2.f32 %v2296_v58  ;;  %v1584_v38 = vsub.f32 1.0, %v1583_v57  ;;  %v1571_v15 = vadd.f32 %v3708_v20, %v1570_v36  ;;  %v1608_v57 = vand.u32 2147483648, %v3761_v59 }
 0x19e   : > { %2525 = vpow2.f32 %v2297_v40  ;;  %v1623_v36 = vand.u32 2147483648, %v3768_v41  ;;  %vm3897_vm15 = vcmp.eq.f32.partialorder %v1606_v22, 8.507059e+37  ;;  %vm1692_vm0 = vweird.f32 %v3772_v18 }
 0x19f   : > { %v1585_v52 = vmul.f32 %v3766_v44, %v1584_v38  ;;  %2527 = vrcp.f32 %v3806_v46  ;;  %v1575_v42 = vsel %vm3845_vm7, %v3708_v20, %v1571_v15  ;;  %v1621_v20 = vand.u32 2147483647, %v3768_v41 }
 0x1a0   : > { %v1113_v43 = vpop.f32.mrf.mxu0  ;;  %v1142_v56 = vpop.f32.mrf.mxu1  ;;  %v1580_v2 = vsel %vm3827_vm9, %v1579_v28, %v1575_v42  ;;  %v1698_v42 = vand.u32 2147483648, %v3772_v18  ;;  %vm1707_vm3 = vweird.f32 %v3806_v46 }
 0x1a1   : > { %v3795_v33 = vpop.eup %2517  ;;  %v3822_v10 = vadd.f32 %v1113_v43, %v3810_v11  ;;  %v3825_v61 = vadd.f32 %v1142_v56, %v3810_v11  ;;  %v1586_v63 = vadd.f32 %v3766_v44, %v1585_v52  ;;  %v1594_v43 = vor.u32 1.1754944e-38, %v1593_v39  ;;  %v3913_v39 = vpop.permute.xlu1 %1970 }
 0x1a2   : > { %v3808_v45 = vpop.eup %2519  ;;  %v1598_v48 = vmul.f32 %v3795_v33, %v3761_v59  ;;  %v1935_v15 = vmul.f32 %v1580_v2, %v3643_v60  ;;  %vm1603_vm13 = vweird.f32 %v3795_v33  ;;  %vm3904_vm1 = vcmp.eq.f32.partialorder %v1621_v20, 8.507059e+37 }
 0x1a3   : > { %v3818_v54 = vpop.eup %2521  ;;  %v1613_v51 = vmul.f32 %v3808_v45, %v3768_v41  ;;  %v2302_v14 = vmul.f32 -1.442695, %v3822_v10  ;;  %v2303_v17 = vmul.f32 -1.442695, %v3825_v61  ;;  %v1590_v27 = vsel %vm3873_vm10, %v3766_v44, %v1586_v63  ;;  %vm3930_vm5 = vmor %vm1602_vm11, %vm1603_vm13 }
 0x1a4   : > { %v2524_v8 = vpop.eup %2523  ;;  %v1688_v23 = vmul.f32 %v3818_v54, %v3772_v18  ;;  %v1599_v35 = vsub.f32 1.0, %v1598_v48  ;;  %v1595_v44 = vsel %vm3861_vm14, %v1594_v43, %v1590_v27  ;;  %v1624_v48 = vor.u32 1.1754944e-38, %v1623_v36 }
 0x1a5   : > { %v3853_v47 = vadd.f32 1.0, %v2524_v8  ;;  %v2526_v53 = vpop.eup %2525  ;;  %v1614_v24 = vsub.f32 1.0, %v1613_v51  ;;  %2529 = vpow2.f32 %v2302_v14  ;;  %v1696_v51 = vand.u32 2147483647, %v3772_v18 }
 0x1a6   : > { %v1689_v38 = vsub.f32 1.0, %v1688_v23  ;;  %v3879_v40 = vpop.eup %2527  ;;  %v3884_v9 = vadd.f32 1.0, %v2526_v53  ;;  %v1600_v56 = vmul.f32 %v3795_v33, %v1599_v35  ;;  %vm1618_vm2 = vweird.f32 %v3808_v45 }
 0x1a7   : > { %v1200_v58 = vpop.f32.mrf.mxu3  ;;  %2531 = vrcp.f32 %v3853_v47  ;;  %v1615_v52 = vmul.f32 %v3808_v45, %v1614_v24  ;;  %v1703_v28 = vmul.f32 %v3879_v40, %v3806_v46  ;;  %v1991_v16 = vmul.f32 %v3913_v39, %v1935_v15  ;;  %vm3950_vm9 = vmor %vm1617_vm12, %vm1618_vm2 }
 0x1a8   : > { %v1171_v37 = vpop.f32.mrf.mxu2  ;;  %2533 = vpow2.f32 %v2303_v17  ;;  %v3887_v7 = vadd.f32 %v1200_v58, %v3810_v11  ;;  %v1690_v50 = vmul.f32 %v3818_v54, %v1689_v38  ;;  %v1601_v23 = vadd.f32 %v3795_v33, %v1600_v56 }
 0x1a9   : > { %v3839_v1 = vadd.f32 %v1171_v37, %v3810_v11  ;;  %v1609_v37 = vor.u32 1.1754944e-38, %v1608_v57  ;;  %v1936_v35 = vmul.f32 %v1595_v44, %v3648_v0  ;;  %v1616_v22 = vadd.f32 %v3808_v45, %v1615_v52  ;;  %v1220_v57 = vpop.f32.mrf.mxu0  ;;  %v1249_v21 = vpop.f32.mrf.mxu1 }
 0x1aa   : > { %v2305_v14 = vmul.f32 -1.442695, %v3887_v7  ;;  %v1691_v53 = vadd.f32 %v3818_v54, %v1690_v50  ;;  %vm1693_vm4 = vweird.f32 %v3818_v54  ;;  %v1704_v24 = vsub.f32 1.0, %v1703_v28 }
 0x1ab   : > { %v2304_v26 = vmul.f32 -1.442695, %v3839_v1  ;;  %v2530_v60 = vpop.eup %2529  ;;  %vm3935_vm6 = vcmp.eq.f32.partialorder %v1696_v51, 8.507059e+37  ;;  %v1605_v36 = vsel %vm3930_vm5, %v3795_v33, %v1601_v23  ;;  %v1699_v18 = vor.u32 1.1754944e-38, %v1698_v42  ;;  %vm3966_vm7 = vmor %vm1692_vm0, %vm1693_vm4 }
 0x1ac   : > { %v3918_v63 = vadd.f32 1.0, %v2530_v60  ;;  %v1711_v38 = vand.u32 2147483647, %v3806_v46  ;;  %v3956_v27 = vadd.f32 %v1220_v57, %v3611_v12  ;;  %v1992_v56 = vmul.f32 %v3913_v39, %v1936_v35 }
 0x1ad   : > { %2535 = vpow2.f32 %v2304_v26  ;;  %v3911_v5 = vpop.eup %2531  ;;  %v1620_v33 = vsel %vm3950_vm9, %v3808_v45, %v1616_v22  ;;  %v3974_v44 = vadd.f32 %v1991_v16, %v3798_v34  ;;  %v1695_v50 = vsel %vm3966_vm7, %v3818_v54, %v1691_v53 }
 0x1ae   : > { %2537 = vrcp.f32 %v3884_v9  ;;  %v2534_v17 = vpop.eup %2533  ;;  %v1718_v15 = vmul.f32 %v3911_v5, %v3853_v47  ;;  %v1705_v45 = vmul.f32 %v3879_v40, %v1704_v24  ;;  %v3981_v28 = vadd.f32 %v1249_v21, %v3611_v12 }
 0x1af   : > { %2539 = vpow2.f32 %v2305_v14  ;;  %v3939_v26 = vadd.f32 1.0, %v2534_v17  ;;  %v1610_v51 = vsel %vm3897_vm15, %v1609_v37, %v1605_v36  ;;  %v1713_v14 = vand.u32 2147483648, %v3806_v46 }
 0x1b0   : > { %2541 = vrcp.f32 %v3918_v63  ;;  %v1278_v52 = vpop.f32.mrf.mxu2  ;;  %v1625_v54 = vsel %vm3904_vm1, %v1624_v48, %v1620_v33  ;;  %vm3992_vm8 = vcmp.eq.f32.partialorder %v1711_v38, 8.507059e+37  ;;  %v2282_v37 = vmul.f32 -1.442695, %v3956_v27 }
 0x1b1   : > { %2543 = vrcp.f32 %v3939_v26  ;;  %v4000_v8 = vadd.f32 %v1278_v52, %v3611_v12  ;;  %v4003_v17 = vadd.f32 %v1992_v56, %v3801_v49  ;;  %v1700_v16 = vsel %vm3935_vm6, %v1699_v18, %v1695_v50 }
 0x1b2   : > { %vm1708_vm14 = vweird.f32 %v3879_v40  ;;  %v1719_v55 = vsub.f32 1.0, %v1718_v15  ;;  %v1706_v48 = vadd.f32 %v3879_v40, %v1705_v45  ;;  %v2283_v57 = vmul.f32 -1.442695, %v3981_v28  ;;  %v4055_v45 = vpop.permute.xlu2 %1975 }
 0x1b3   : > { %v2536_v58 = vpop.eup %2535  ;;  %v1937_v49 = vmul.f32 %v1610_v51, %v3664_v62  ;;  %v1938_v53 = vmul.f32 %v1625_v54, %v3671_v4  ;;  %v1714_v24 = vor.u32 1.1754944e-38, %v1713_v14  ;;  %v1726_v20 = vand.u32 2147483647, %v3853_v47  ;;  %vm4028_vm10 = vmor %vm1707_vm3, %vm1708_vm14 }
 0x1b4   : > { %v3941_v2 = vadd.f32 1.0, %v2536_v58  ;;  %v3958_v43 = vpop.eup %2537  ;;  %v1728_v0 = vand.u32 2147483648, %v3853_v47  ;;  %v2284_v36 = vmul.f32 -1.442695, %v4000_v8  ;;  %v1943_v18 = vmul.f32 %v1700_v16, %v3680_v30 }
 0x1b5   : > { %v2540_v60 = vpop.eup %2539  ;;  %v1733_v42 = vmul.f32 %v3958_v43, %v3884_v9  ;;  %v1720_v4 = vmul.f32 %v3911_v5, %v1719_v55  ;;  %v1710_v56 = vsel %vm4028_vm10, %v3879_v40, %v1706_v48  ;;  %v4042_v46 = vmul.f32 %v3913_v39, %v1937_v49 }
 0x1b6   : > { %2545 = vrcp.f32 %v3941_v2  ;;  %v3988_v34 = vpop.eup %2541  ;;  %v4011_v22 = vadd.f32 1.0, %v2540_v60  ;;  %vm1722_vm11 = vweird.f32 %v3853_v47  ;;  %v1741_v41 = vand.u32 2147483647, %v3884_v9 }
 0x1b7   : > { %v1808_v35 = vmul.f32 %v3988_v34, %v3918_v63  ;;  %v4014_v58 = vpop.eup %2543  ;;  %v1734_v21 = vsub.f32 1.0, %v1733_v42  ;;  %2547 = vpow2.f32 %v2282_v37  ;;  %v1743_v15 = vand.u32 2147483648, %v3884_v9 }
 0x1b8   : > { %v1823_v38 = vmul.f32 %v4014_v58, %v3939_v26  ;;  %2549 = vrcp.f32 %v4011_v22  ;;  %v4048_v52 = vmul.f32 %v3913_v39, %v1938_v53  ;;  %vm4050_vm12 = vcmp.eq.f32.partialorder %v1726_v20, 8.507059e+37 }
 0x1b9   : > { %v1809_v30 = vsub.f32 1.0, %v1808_v35  ;;  %2551 = vpow2.f32 %v2283_v57  ;;  %v1735_v40 = vmul.f32 %v3958_v43, %v1734_v21  ;;  %v1715_v60 = vsel %vm3992_vm8, %v1714_v24, %v1710_v56 }
 0x1ba   : > { %2553 = vpow2.f32 %v2284_v36  ;;  %v1721_v51 = vadd.f32 %v3911_v5, %v1720_v4  ;;  %vm1723_vm13 = vweird.f32 %v3911_v5  ;;  %v1824_v14 = vsub.f32 1.0, %v1823_v38 }
 0x1bb   : > { %v4062_v42 = vmul.f32 %v4055_v45, %v1943_v18  ;;  %v1729_v37 = vor.u32 1.1754944e-38, %v1728_v0  ;;  %v1810_v16 = vmul.f32 %v3988_v34, %v1809_v30  ;;  %vm1737_vm15 = vweird.f32 %v3884_v9  ;;  %vm4076_vm2 = vmor %vm1722_vm11, %vm1723_vm13 }
 0x1bc   : > { %v4021_v59 = vpop.eup %2545  ;;  %vm4068_vm1 = vcmp.eq.f32.partialorder %v1741_v41, 8.507059e+37  ;;  %v1744_v35 = vor.u32 1.1754944e-38, %v1743_v15  ;;  %v1818_v57 = vand.u32 2147483648, %v3918_v63  ;;  %v1944_v53 = vmul.f32 %v1715_v60, %v3699_v25 }
 0x1bd   : > { %v1838_v33 = vmul.f32 %v4021_v59, %v3941_v2  ;;  %v2548_v54 = vpop.eup %2547  ;;  %v1736_v20 = vadd.f32 %v3958_v43, %v1735_v40  ;;  %vm1738_vm4 = vweird.f32 %v3958_v43  ;;  %v1725_v21 = vsel %vm4076_vm2, %v3911_v5, %v1721_v51  ;;  %v1307_v51 = vpop.f32.mrf.mxu3 }
 0x1be   : > { %v4065_v48 = vpop.eup %2549  ;;  %vm1812_vm5 = vweird.f32 %v3918_v63  ;;  %v1825_v25 = vmul.f32 %v4014_v58, %v1824_v14  ;;  %v4089_v47 = vadd.f32 1.0, %v2548_v54  ;;  %v1811_v18 = vadd.f32 %v3988_v34, %v1810_v16  ;;  %vm4097_vm6 = vmor %vm1737_vm15, %vm1738_vm4 }
 0x1bf   : > { %v1839_v55 = vsub.f32 1.0, %v1838_v33  ;;  %v2552_v49 = vpop.eup %2551  ;;  %v1853_v0 = vmul.f32 %v4065_v48, %v4011_v22  ;;  %vm1813_vm0 = vweird.f32 %v3988_v34  ;;  %v1816_v62 = vand.u32 2147483647, %v3918_v63 }
 0x1c0   : > { %v2554_v36 = vpop.eup %2553  ;;  %v1819_v5 = vor.u32 1.1754944e-38, %v1818_v57  ;;  %vm1827_vm9 = vweird.f32 %v3939_v26  ;;  %v4102_v30 = vadd.f32 1.0, %v2552_v49  ;;  %v1730_v33 = vsel %vm4050_vm12, %v1729_v37, %v1725_v21  ;;  %vm4113_vm7 = vmor %vm1812_vm5, %vm1813_vm0 }
 0x1c1   : > { %v1840_v4 = vmul.f32 %v4021_v59, %v1839_v55  ;;  %v1854_v56 = vsub.f32 1.0, %v1853_v0  ;;  %v1740_v41 = vsel %vm4097_vm6, %v3958_v43, %v1736_v20  ;;  %v1831_v15 = vand.u32 2147483647, %v3939_v26 }
 0x1c2   : > { %v1833_v9 = vand.u32 2147483648, %v3939_v26  ;;  %v1826_v60 = vadd.f32 %v4014_v58, %v1825_v25  ;;  %vm1828_vm3 = vweird.f32 %v4014_v58  ;;  %2555 = vrcp.f32 %v4089_v47  ;;  %v1223_v26 = vpop.f32.mrf.mxu0 }
 0x1c3   : > { %v4120_v50 = vadd.f32 1.0, %v2554_v36  ;;  %v1815_v43 = vsel %vm4113_vm7, %v3988_v34, %v1811_v18  ;;  %v1841_v14 = vadd.f32 %v4021_v59, %v1840_v4  ;;  %vm1843_vm8 = vweird.f32 %v4021_v59  ;;  %vm4136_vm10 = vmor %vm1827_vm9, %vm1828_vm3 }
 0x1c4   : > { %v1846_v63 = vand.u32 2147483647, %v3941_v2  ;;  %v1745_v54 = vsel %vm4068_vm1, %v1744_v35, %v1740_v41  ;;  %v1848_v37 = vand.u32 2147483648, %v3941_v2  ;;  %v1855_v16 = vmul.f32 %v4065_v48, %v1854_v56 }
 0x1c5   : > { %2557 = vrcp.f32 %v4102_v30  ;;  %v1945_v55 = vmul.f32 %v1730_v33, %v3764_v31  ;;  %vm1817_vm14 = vcmp.eq.f32.partialorder %v1816_v62, 8.507059e+37  ;;  %vm1842_vm11 = vweird.f32 %v3941_v2 }
 0x1c6   : > { %v4142_v23 = vadd.f32 %v1307_v51, %v3611_v12  ;;  %v2000_v35 = vmul.f32 %v4055_v45, %v1944_v53  ;;  %v1820_v57 = vsel %vm1817_vm14, %v1819_v5, %v1815_v43  ;;  %v1830_v49 = vsel %vm4136_vm10, %v4014_v58, %v1826_v60  ;;  %vm4148_vm12 = vmor %vm1842_vm11, %vm1843_vm8  ;;  %v1252_v53 = vpop.f32.mrf.mxu1 }
 0x1c7   : > { %2559 = vrcp.f32 %v4120_v50  ;;  %v1946_v24 = vmul.f32 %v1745_v54, %v3781_v13  ;;  %vm1832_vm13 = vcmp.eq.f32.partialorder %v1831_v15, 8.507059e+37  ;;  %v1834_v2 = vor.u32 1.1754944e-38, %v1833_v9 }
 0x1c8   : > { %v1845_v12 = vsel %vm4148_vm12, %v4021_v59, %v1841_v14  ;;  %v4157_v20 = vpop.eup %2555  ;;  %vm1847_vm15 = vcmp.eq.f32.partialorder %v1846_v63, 8.507059e+37  ;;  %v1849_v58 = vor.u32 1.1754944e-38, %v1848_v37  ;;  %v1856_v0 = vadd.f32 %v4065_v48, %v1855_v16  ;;  %v1310_v37 = vpop.f32.mrf.mxu3 }
 0x1c9   : > { %vm1858_vm1 = vweird.f32 %v4065_v48  ;;  %v2001_v21 = vmul.f32 %v4055_v45, %v1945_v55  ;;  %v1951_v25 = vmul.f32 %v1820_v57, %v3822_v10  ;;  %v1835_v13 = vsel %vm1832_vm13, %v1834_v2, %v1830_v49 }
 0x1ca   : > { %v1863_v36 = vand.u32 2147483648, %v4011_v22  ;;  %v1850_v62 = vsel %vm1847_vm15, %v1849_v58, %v1845_v12  ;;  %vm1857_vm2 = vweird.f32 %v4011_v22  ;;  %v1861_v59 = vand.u32 2147483647, %v4011_v22  ;;  %v4182_v22 = vpop.permute.xlu0 %1980  ;;  %v1226_v16 = vpop.f32.mrf.mxu0 }
 0x1cb   : > { %v4164_v18 = vpop.eup %2557  ;;  %v2285_v4 = vmul.f32 -1.442695, %v4142_v23  ;;  %v2033_v38 = vadd.f32 %v4042_v46, %v3804_v19  ;;  %v2042_v5 = vadd.f32 %v4048_v52, %v3813_v3  ;;  %v2002_v10 = vmul.f32 %v4055_v45, %v1946_v24  ;;  %vm4174_vm4 = vmor %vm1857_vm2, %vm1858_vm1 }
 0x1cc   : > { %v1508_v33 = vmul.f32 %v4157_v20, %v4089_v47  ;;  %v2016_v15 = vadd.f32 %v3974_v44, %v4062_v42  ;;  %v2025_v19 = vadd.f32 %v4003_v17, %v2000_v35  ;;  %v1952_v3 = vmul.f32 %v1835_v13, %v3825_v61  ;;  %v1281_v17 = vpop.f32.mrf.mxu2 }
 0x1cd   : > { %v4180_v41 = vpop.eup %2559  ;;  %v1860_v46 = vsel %vm4174_vm4, %v4065_v48, %v1856_v0  ;;  %v2007_v52 = vmul.f32 %v4182_v22, %v1951_v25  ;;  %v1953_v9 = vmul.f32 %v1850_v62, %v3839_v1  ;;  %v1864_v40 = vor.u32 1.1754944e-38, %v1863_v36 }
 0x1ce   : > { %v1523_v60 = vmul.f32 %v4164_v18, %v4102_v30  ;;  %v2034_v51 = vadd.f32 %v2033_v38, %v2001_v21  ;;  %vm1862_vm5 = vcmp.eq.f32.partialorder %v1861_v59, 8.507059e+37  ;;  %v1538_v44 = vmul.f32 %v4180_v41, %v4120_v50  ;;  %v1255_v49 = vpop.f32.mrf.mxu1 }
 0x1cf   : > { %2561 = vpow2.f32 %v2285_v4  ;;  %v2043_v61 = vadd.f32 %v2042_v5, %v2002_v10  ;;  %v1865_v42 = vsel %vm1862_vm5, %v1864_v40, %v1860_v46  ;;  %v1509_v43 = vsub.f32 1.0, %v1508_v33 }
 0x1d0   : > { %v1516_v48 = vand.u32 2147483647, %v4089_v47  ;;  %v2008_v14 = vmul.f32 %v4182_v22, %v1952_v3  ;;  %v1518_v1 = vand.u32 2147483648, %v4089_v47  ;;  %v4201_v63 = vadd.f32 %v1223_v26, %v3638_v29 }
 0x1d1   : > { %v4204_v54 = vadd.f32 %v1252_v53, %v3638_v29  ;;  %v4206_v55 = vadd.f32 %v2016_v15, %v2007_v52  ;;  %v2009_v34 = vmul.f32 %v4182_v22, %v1953_v9  ;;  %vm1512_vm0 = vweird.f32 %v4089_v47 }
 0x1d2   : > { %v1524_v35 = vsub.f32 1.0, %v1523_v60  ;;  %v4211_v57 = vadd.f32 %v1281_v17, %v3638_v29  ;;  %v1954_v31 = vmul.f32 %v1865_v42, %v3887_v7  ;;  %v1539_v26 = vsub.f32 1.0, %v1538_v44  ;;  %v1229_v40 = vpop.f32.mrf.mxu0 }
 0x1d3   : > { %v2290_v24 = vmul.f32 -1.442695, %v4201_v63  ;;  %v2291_v2 = vmul.f32 -1.442695, %v4204_v54  ;;  %v1510_v12 = vmul.f32 %v4157_v20, %v1509_v43  ;;  %v4219_v58 = vadd.f32 %v1310_v37, %v3638_v29 }
 0x1d4   : > { %v2292_v53 = vmul.f32 -1.442695, %v4211_v57  ;;  %v4222_v0 = vadd.f32 %v1226_v16, %v3675_v6  ;;  %v2026_v25 = vadd.f32 %v2025_v19, %v2008_v14  ;;  %v1519_v13 = vor.u32 1.1754944e-38, %v1518_v1 }
 0x1d5   : > { %v2562_v21 = vpop.eup %2561  ;;  %2563 = vpow2.f32 %v2290_v24  ;;  %v4225_v7 = vadd.f32 %v1255_v49, %v3675_v6  ;;  %vm4227_vm6 = vcmp.eq.f32.partialorder %v1516_v48, 8.507059e+37  ;;  %v1525_v62 = vmul.f32 %v4164_v18, %v1524_v35 }
 0x1d6   : > { %v4232_v59 = vadd.f32 1.0, %v2562_v21  ;;  %2565 = vpow2.f32 %v2291_v2  ;;  %v2293_v29 = vmul.f32 -1.442695, %v4219_v58  ;;  %v2010_v4 = vmul.f32 %v4182_v22, %v1954_v31  ;;  %v1258_v47 = vpop.f32.mrf.mxu1 }
 0x1d7   : > { %v1540_v38 = vmul.f32 %v4180_v41, %v1539_v26  ;;  %2567 = vpow2.f32 %v2292_v53  ;;  %v2298_v5 = vmul.f32 -1.442695, %v4222_v0  ;;  %v2035_v10 = vadd.f32 %v2034_v51, %v2009_v34 }
 0x1d8   : > { %v1511_v56 = vadd.f32 %v4157_v20, %v1510_v12  ;;  %vm1513_vm9 = vweird.f32 %v4157_v20  ;;  %2569 = vrcp.f32 %v4232_v59  ;;  %vm1527_vm7 = vweird.f32 %v4102_v30 }
 0x1d9   : > { %v1531_v33 = vand.u32 2147483647, %v4102_v30  ;;  %2571 = vpow2.f32 %v2293_v29  ;;  %v2299_v15 = vmul.f32 -1.442695, %v4225_v7  ;;  %v1526_v19 = vadd.f32 %v4164_v18, %v1525_v62  ;;  %vm4249_vm8 = vmor %vm1512_vm0, %vm1513_vm9 }
 0x1da   : > { %vm1528_vm3 = vweird.f32 %v4164_v18  ;;  %v1533_v3 = vand.u32 2147483648, %v4102_v30  ;;  %2573 = vpow2.f32 %v2298_v5  ;;  %v2027_v52 = vrot.slane %v2026_v25, 4 }
 0x1db   : > { %v2564_v46 = vpop.eup %2563  ;;  %v2044_v9 = vadd.f32 %v2043_v61, %v2010_v4  ;;  %v1541_v60 = vadd.f32 %v4180_v41, %v1540_v38  ;;  %vm1543_vm14 = vweird.f32 %v4180_v41  ;;  %v2036_v44 = vrot.slane %v2035_v10, 4  ;;  %vm4265_vm10 = vmor %vm1527_vm7, %vm1528_vm3 }
 0x1dc   : > { %v2566_v51 = vpop.eup %2565  ;;  %v1515_v17 = vsel %vm4249_vm8, %v4157_v20, %v1511_v56  ;;  %v1548_v42 = vand.u32 2147483648, %v4120_v50  ;;  %v4259_v43 = vadd.f32 1.0, %v2564_v46  ;;  %vm1542_vm11 = vweird.f32 %v4120_v50 }
 0x1dd   : > { %v2568_v61 = vpop.eup %2567  ;;  %v1546_v48 = vand.u32 2147483647, %v4120_v50  ;;  %v4271_v14 = vadd.f32 1.0, %v2566_v51  ;;  %2575 = vpow2.f32 %v2299_v15  ;;  %v1530_v1 = vsel %vm4265_vm10, %v4164_v18, %v1526_v19  ;;  %vm4280_vm13 = vmor %vm1542_vm11, %vm1543_vm14  ;;  %v1284_v50 = vpop.f32.mrf.mxu2 }
 0x1de   : > { %v4273_v20 = vpop.eup %2569  ;;  %vm1532_vm12 = vcmp.eq.f32.partialorder %v1531_v33, 8.507059e+37  ;;  %v1534_v37 = vor.u32 1.1754944e-38, %v1533_v3  ;;  %2577 = vrcp.f32 %v4259_v43  ;;  %v2045_v34 = vrot.slane %v2044_v9, 4 }
 0x1df   : > { %v2572_v16 = vpop.eup %2571  ;;  %v1520_v35 = vsel %vm4227_vm6, %v1519_v13, %v1515_v17  ;;  %v1545_v18 = vsel %vm4280_vm13, %v4180_v41, %v1541_v60  ;;  %2579 = vrcp.f32 %v4271_v14  ;;  %v4291_v31 = vadd.f32 %v2027_v52, %v2026_v25 }
 0x1e0   : > { %v2574_v49 = vpop.eup %2573  ;;  %v4293_v26 = vadd.f32 %v2036_v44, %v2035_v10  ;;  %v1549_v24 = vor.u32 1.1754944e-38, %v1548_v42  ;;  %v1553_v2 = vmul.f32 %v4273_v20, %v4232_v59  ;;  %v1535_v12 = vsel %vm1532_vm12, %v1534_v37, %v1530_v1 }
 0x1e1   : > { %vm1547_vm15 = vcmp.eq.f32.partialorder %v1546_v48, 8.507059e+37  ;;  %v4297_v53 = vadd.f32 1.0, %v2568_v61  ;;  %v4300_v21 = vadd.f32 %v1284_v50, %v3675_v6  ;;  %v1931_v41 = vmul.f32 %v1520_v35, %v3956_v27  ;;  %v1313_v27 = vpop.f32.mrf.mxu3 }
 0x1e2   : > { %v1550_v13 = vsel %vm1547_vm15, %v1549_v24, %v1545_v18  ;;  %v4303_v36 = vadd.f32 1.0, %v2572_v16  ;;  %v4305_v62 = vadd.f32 %v2045_v34, %v2044_v9  ;;  %v4308_v29 = vadd.f32 1.0, %v2574_v49 }
 0x1e3   : > { %v2576_v25 = vpop.eup %2575  ;;  %2581 = vrcp.f32 %v4297_v53  ;;  %v2018_v38 = vrot.slane %v4206_v55, 4  ;;  %v1932_v10 = vmul.f32 %v1535_v12, %v3981_v28  ;;  %v1554_v56 = vsub.f32 1.0, %v1553_v2 }
 0x1e4   : > { %v4310_v4 = vpop.eup %2577  ;;  %v2038_v15 = vrot.slane %v4293_v26, 2  ;;  %v1933_v19 = vmul.f32 %v1550_v13, %v4000_v8  ;;  %v2300_v46 = vmul.f32 -1.442695, %v4300_v21  ;;  %v4323_v52 = vmul.f32 %v3790_v32, %v1931_v41 }
 0x1e5   : > { %v4315_v33 = vpop.eup %2579  ;;  %v1628_v3 = vmul.f32 %v4310_v4, %v4259_v43  ;;  %v1561_v9 = vand.u32 2147483647, %v4232_v59  ;;  %v1563_v28 = vand.u32 2147483648, %v4232_v59  ;;  %2583 = vrcp.f32 %v4303_v36 }
 0x1e6   : > { %v2047_v60 = vrot.slane %v4305_v62, 2  ;;  %v1643_v8 = vmul.f32 %v4315_v33, %v4271_v14  ;;  %2585 = vrcp.f32 %v4308_v29  ;;  %v4333_v51 = vadd.f32 %v1313_v27, %v3675_v6 }
 0x1e7   : > { %v4336_v44 = vmul.f32 %v3790_v32, %v1932_v10  ;;  %v1555_v17 = vmul.f32 %v4273_v20, %v1554_v56  ;;  %v1629_v42 = vsub.f32 1.0, %v1628_v3  ;;  %v4339_v61 = vadd.f32 1.0, %v2576_v25 }
 0x1e8   : > { %v4344_v1 = vmul.f32 %v3790_v32, %v1933_v19  ;;  %vm1557_vm1 = vweird.f32 %v4232_v59  ;;  %2587 = vpow2.f32 %v2300_v46  ;;  %v4348_v6 = vadd.f32 %v1229_v40, %v3810_v11 }
 0x1e9   : > { %v4341_v48 = vpop.eup %2581  ;;  %vm4350_vm2 = vcmp.eq.f32.partialorder %v1561_v9, 8.507059e+37  ;;  %v1564_v30 = vor.u32 1.1754944e-38, %v1563_v28  ;;  %v1636_v50 = vand.u32 2147483647, %v4259_v43  ;;  %v1638_v16 = vand.u32 2147483648, %v4259_v43 }
 0x1ea   : > { %v1644_v34 = vsub.f32 1.0, %v1643_v8  ;;  %v1658_v35 = vmul.f32 %v4341_v48, %v4297_v53  ;;  %v2301_v18 = vmul.f32 -1.442695, %v4333_v51  ;;  %v4360_v49 = vadd.f32 %v1258_v47, %v3810_v11 }
 0x1eb   : > { %v4362_v24 = vpop.eup %2583  ;;  %v1556_v2 = vadd.f32 %v4273_v20, %v1555_v17  ;;  %vm1558_vm4 = vweird.f32 %v4273_v20  ;;  %v1630_v12 = vmul.f32 %v4310_v4, %v1629_v42  ;;  %2589 = vrcp.f32 %v4339_v61 }
 0x1ec   : > { %v4368_v41 = vpop.eup %2585  ;;  %vm1632_vm5 = vweird.f32 %v4259_v43  ;;  %v1651_v13 = vand.u32 2147483647, %v4271_v14  ;;  %v1653_v25 = vand.u32 2147483648, %v4271_v14  ;;  %v2306_v10 = vmul.f32 -1.442695, %v4348_v6  ;;  %vm4383_vm9 = vmor %vm1557_vm1, %vm1558_vm4 }
 0x1ed   : > { %vm4374_vm0 = vcmp.eq.f32.partialorder %v1636_v50, 8.507059e+37  ;;  %v1639_v27 = vor.u32 1.1754944e-38, %v1638_v16  ;;  %vm1647_vm6 = vweird.f32 %v4271_v14  ;;  %v1748_v19 = vmul.f32 %v4368_v41, %v4308_v29 }
 0x1ee   : > { %v2588_v3 = vpop.eup %2587  ;;  %vm1633_vm7 = vweird.f32 %v4310_v4  ;;  %v1645_v9 = vmul.f32 %v4315_v33, %v1644_v34  ;;  %v1659_v28 = vsub.f32 1.0, %v1658_v35  ;;  %v1668_v40 = vand.u32 2147483648, %v4297_v53 }
 0x1ef   : > { %v1560_v8 = vsel %vm4383_vm9, %v4273_v20, %v1556_v2  ;;  %v1631_v17 = vadd.f32 %v4310_v4, %v1630_v12  ;;  %v1673_v59 = vmul.f32 %v4362_v24, %v4303_v36  ;;  %v1749_v42 = vsub.f32 1.0, %v1748_v19  ;;  %vm4415_vm10 = vmor %vm1632_vm5, %vm1633_vm7 }
 0x1f0   : > { %vm4396_vm3 = vcmp.eq.f32.partialorder %v1651_v13, 8.507059e+37  ;;  %v1654_v50 = vor.u32 1.1754944e-38, %v1653_v25  ;;  %vm1662_vm8 = vweird.f32 %v4297_v53  ;;  %v1666_v16 = vand.u32 2147483647, %v4297_v53 }
 0x1f1   : > { %v1681_v34 = vand.u32 2147483647, %v4303_v36  ;;  %v4403_v35 = vpop.eup %2589  ;;  %vm1648_vm14 = vweird.f32 %v4315_v33  ;;  %v1683_v20 = vand.u32 2147483648, %v4303_v36  ;;  %v4407_v2 = vadd.f32 1.0, %v2588_v3 }
 0x1f2   : > { %2591 = vpow2.f32 %v2301_v18  ;;  %v1565_v12 = vsel %vm4350_vm2, %v1564_v30, %v1560_v8  ;;  %v1646_v25 = vadd.f32 %v4315_v33, %v1645_v9  ;;  %v1660_v19 = vmul.f32 %v4341_v48, %v1659_v28  ;;  %vm4441_vm13 = vmor %vm1647_vm6, %vm1648_vm14 }
 0x1f3   : > { %v1763_v3 = vmul.f32 %v4403_v35, %v4339_v61  ;;  %v1635_v37 = vsel %vm4415_vm10, %v4310_v4, %v1631_v17  ;;  %v1669_v30 = vor.u32 1.1754944e-38, %v1668_v40  ;;  %v1674_v18 = vsub.f32 1.0, %v1673_v59 }
 0x1f4   : > { %v1750_v46 = vmul.f32 %v4368_v41, %v1749_v42  ;;  %vm4427_vm11 = vcmp.eq.f32.partialorder %v1666_v16, 8.507059e+37  ;;  %vm1752_vm12 = vweird.f32 %v4308_v29  ;;  %v1756_v9 = vand.u32 2147483647, %v4308_v29  ;;  %v1287_v42 = vpop.f32.mrf.mxu2 }
 0x1f5   : > { %v1758_v28 = vand.u32 2147483648, %v4308_v29  ;;  %v1764_v8 = vsub.f32 1.0, %v1763_v3  ;;  %v4435_v5 = vmul.f32 %v1565_v12, %v4142_v23  ;;  %vm1663_vm15 = vweird.f32 %v4341_v48 }
 0x1f6   : > { %vm1677_vm1 = vweird.f32 %v4303_v36  ;;  %v4447_v40 = vor.u32 1.1754944e-38, %v1683_v20  ;;  %2593 = vrcp.f32 %v4407_v2  ;;  %v1640_v23 = vsel %vm4374_vm0, %v1639_v27, %v1635_v37  ;;  %vm4474_vm0 = vmor %vm1662_vm8, %vm1663_vm15 }
 0x1f7   : > { %v1650_v17 = vsel %vm4441_vm13, %v4315_v33, %v1646_v25  ;;  %v1661_v14 = vadd.f32 %v4341_v48, %v1660_v19  ;;  %v1765_v59 = vmul.f32 %v4403_v35, %v1764_v8  ;;  %v1675_v12 = vmul.f32 %v4362_v24, %v1674_v18 }
 0x1f8   : > { %v2592_v16 = vpop.eup %2591  ;;  %v1751_v20 = vadd.f32 %v4368_v41, %v1750_v46  ;;  %vm1753_vm2 = vweird.f32 %v4368_v41  ;;  %2595 = vpow2.f32 %v2306_v10  ;;  %vm1678_vm4 = vweird.f32 %v4362_v24 }
 0x1f9   : > { %vm4461_vm5 = vcmp.eq.f32.partialorder %v1756_v9, 8.507059e+37  ;;  %v1759_v33 = vor.u32 1.1754944e-38, %v1758_v28  ;;  %v4465_v27 = vadd.f32 1.0, %v2592_v16  ;;  %v1939_v13 = vmul.f32 %v1640_v23, %v4201_v63  ;;  %vm4491_vm9 = vmor %vm1752_vm12, %vm1753_vm2 }
 0x1fa   : > { %v1655_v25 = vsel %vm4396_vm3, %v1654_v50, %v1650_v17  ;;  %vm4478_vm6 = vcmp.eq.f32.partialorder %v1681_v34, 8.507059e+37  ;;  %v2307_v3 = vmul.f32 -1.442695, %v4360_v49  ;;  %v4484_v37 = vadd.f32 %v1287_v42, %v3810_v11  ;;  %v1316_v50 = vpop.f32.mrf.mxu3  ;;  %vm4527_vm14 = vmor %vm1677_vm1, %vm1678_vm4 }
 0x1fb   : > { %v1665_v63 = vsel %vm4474_vm0, %v4341_v48, %v1661_v14  ;;  %v1766_v47 = vadd.f32 %v4403_v35, %v1765_v59  ;;  %vm1768_vm7 = vweird.f32 %v4403_v35  ;;  %2597 = vrcp.f32 %v4465_v27 }
 0x1fc   : > { %v4498_v34 = vpop.eup %2593  ;;  %v1676_v18 = vadd.f32 %v4362_v24, %v1675_v12  ;;  %v1755_v48 = vsel %vm4491_vm9, %v4368_v41, %v1751_v20  ;;  %v1773_v29 = vand.u32 2147483648, %v4339_v61  ;;  %2599 = vpow2.f32 %v2307_v3 }
 0x1fd   : > { %v1940_v46 = vmul.f32 %v1655_v25, %v4204_v54  ;;  %vm1767_vm3 = vweird.f32 %v4339_v61  ;;  %v1771_v9 = vand.u32 2147483647, %v4339_v61  ;;  %v1778_v28 = vmul.f32 %v4498_v34, %v4407_v2 }
 0x1fe   : > { %v2596_v8 = vpop.eup %2595  ;;  %v1995_v4 = vmul.f32 %v3913_v39, %v1939_v13  ;;  %v1670_v23 = vsel %vm4427_vm11, %v1669_v30, %v1665_v63  ;;  %vm4515_vm8 = vmor %vm1767_vm3, %vm1768_vm7  ;;  %v2308_v54 = vmul.f32 -1.442695, %v4484_v37  ;;  %v4521_v17 = vadd.f32 %v1316_v50, %v3810_v11 }
 0x1ff   : > { %v1760_v30 = vsel %vm4461_vm5, %v1759_v33, %v1755_v48  ;;  %v1770_v43 = vsel %vm4515_vm8, %v4403_v35, %v1766_v47  ;;  %v1779_v14 = vsub.f32 1.0, %v1778_v28  ;;  %v4536_v59 = vadd.f32 1.0, %v2596_v8 }
 0x200   : > { %v1680_v11 = vsel %vm4527_vm14, %v4362_v24, %v1676_v18  ;;  %v1774_v42 = vor.u32 1.1754944e-38, %v1773_v29  ;;  %2601 = vpow2.f32 %v2308_v54  ;;  %v2309_v36 = vmul.f32 -1.442695, %v4521_v17 }
 0x201   : > { %v4542_v16 = vpop.eup %2597  ;;  %v1996_v12 = vmul.f32 %v3913_v39, %v1940_v46  ;;  %vm1772_vm10 = vcmp.eq.f32.partialorder %v1771_v9, 8.507059e+37  ;;  %v1780_v20 = vmul.f32 %v4498_v34, %v1779_v14  ;;  %2603 = vrcp.f32 %v4536_v59 }
 0x202   : > { %v2600_v35 = vpop.eup %2599  ;;  %v1941_v56 = vmul.f32 %v1670_v23, %v4211_v57  ;;  %v1947_v33 = vmul.f32 %v1760_v30, %v4222_v0  ;;  %v1775_v13 = vsel %vm1772_vm10, %v1774_v42, %v1770_v43  ;;  %v1793_v24 = vmul.f32 %v4542_v16, %v4465_v27 }
 0x203   : > { %v4553_v25 = vmul.f32 %v3790_v32, %v4435_v5  ;;  %v1685_v10 = vsel %vm4478_vm6, %v4447_v40, %v1680_v11  ;;  %v4558_v3 = vadd.f32 1.0, %v2600_v35  ;;  %2605 = vpow2.f32 %v2309_v36 }
 0x204   : > { %v2051_v63 = vadd.f32 %v1995_v4, %v4323_v52  ;;  %v1786_v57 = vand.u32 2147483647, %v4407_v2  ;;  %v1788_v0 = vand.u32 2147483648, %v4407_v2  ;;  %v1794_v53 = vsub.f32 1.0, %v1793_v24 }
 0x205   : > { %v1948_v47 = vmul.f32 %v1775_v13, %v4225_v7  ;;  %v1781_v50 = vadd.f32 %v4498_v34, %v1780_v20  ;;  %vm1783_vm11 = vweird.f32 %v4498_v34  ;;  %2607 = vrcp.f32 %v4558_v3 }
 0x206   : > { %v2602_v32 = vpop.eup %2601  ;;  %v2060_v5 = vadd.f32 %v1996_v12, %v4336_v44  ;;  %v4569_v40 = vmul.f32 %v3913_v39, %v1941_v56  ;;  %v4572_v52 = vmul.f32 %v1685_v10, %v4219_v58  ;;  %v2003_v19 = vmul.f32 %v4055_v45, %v1947_v33 }
 0x207   : > { %v2604_v18 = vpop.eup %2603  ;;  %vm1782_vm12 = vweird.f32 %v4407_v2  ;;  %v1795_v7 = vmul.f32 %v4542_v16, %v1794_v53  ;;  %v1801_v48 = vand.u32 2147483647, %v4465_v27  ;;  %v4578_v29 = vadd.f32 1.0, %v2602_v32 }
 0x208   : > { %vm4580_vm13 = vmor %vm1782_vm12, %vm1783_vm11  ;;  %vm4584_vm15 = vcmp.eq.f32.partialorder %v1786_v57, 8.507059e+37  ;;  %v1789_v58 = vor.u32 1.1754944e-38, %v1788_v0  ;;  %vm1797_vm1 = vweird.f32 %v4465_v27  ;;  %v1868_v9 = vmul.f32 %v2604_v18, %v4536_v59 }
 0x209   : > { %v2606_v2 = vpop.eup %2605  ;;  %v2004_v28 = vmul.f32 %v4055_v45, %v1948_v47  ;;  %v1785_v8 = vsel %vm4580_vm13, %v4498_v34, %v1781_v50  ;;  %v1803_v4 = vand.u32 2147483648, %v4465_v27  ;;  %2609 = vrcp.f32 %v4578_v29 }
 0x20a   : > { %v2052_v23 = vadd.f32 %v2051_v63, %v2003_v19  ;;  %v1869_v41 = vsub.f32 1.0, %v1868_v9  ;;  %v1876_v54 = vand.u32 2147483647, %v4536_v59  ;;  %v4597_v61 = vadd.f32 1.0, %v2606_v2 }
 0x20b   : > { %v2608_v30 = vpop.eup %2607  ;;  %v1796_v43 = vadd.f32 %v4542_v16, %v1795_v7  ;;  %vm1798_vm2 = vweird.f32 %v4542_v16  ;;  %vm4601_vm4 = vcmp.eq.f32.partialorder %v1801_v48, 8.507059e+37  ;;  %v1878_v34 = vand.u32 2147483648, %v4536_v59 }
 0x20c   : > { %v1790_v11 = vsel %vm4584_vm15, %v1789_v58, %v1785_v8  ;;  %v1870_v42 = vmul.f32 %v2604_v18, %v1869_v41  ;;  %vm1873_vm5 = vweird.f32 %v2604_v18  ;;  %v1883_v36 = vmul.f32 %v2608_v30, %v4558_v3  ;;  %vm4613_vm0 = vmor %vm1797_vm1, %vm1798_vm2 }
 0x20d   : > { %v2061_v12 = vadd.f32 %v2060_v5, %v2004_v28  ;;  %v1804_v20 = vor.u32 1.1754944e-38, %v1803_v4  ;;  %v1891_v35 = vand.u32 2147483647, %v4558_v3  ;;  %2611 = vrcp.f32 %v4597_v61 }
 0x20e   : > { %v1871_v33 = vadd.f32 %v2604_v18, %v1870_v42  ;;  %vm1872_vm6 = vweird.f32 %v4536_v59  ;;  %vm1877_vm9 = vcmp.eq.f32.partialorder %v1876_v54, 8.507059e+37  ;;  %v1884_v13 = vsub.f32 1.0, %v1883_v36 }
 0x20f   : > { %v2610_v24 = vpop.eup %2609  ;;  %v1949_v10 = vmul.f32 %v1790_v11, %v4300_v21  ;;  %v1800_v63 = vsel %vm4613_vm0, %v4542_v16, %v1796_v43  ;;  %vm1874_vm7 = vmor %vm1872_vm6, %vm1873_vm5  ;;  %v1879_v57 = vor.u32 1.1754944e-38, %v1878_v34  ;;  %v1893_v27 = vand.u32 2147483648, %v4558_v3 }
 0x210   : > { %v1875_v0 = vsel %vm1874_vm7, %v2604_v18, %v1871_v33  ;;  %v1885_v53 = vmul.f32 %v2608_v30, %v1884_v13  ;;  %vm1888_vm3 = vweird.f32 %v2608_v30  ;;  %v1898_v47 = vmul.f32 %v2610_v24, %v4578_v29 }
 0x211   : > { %v1880_v50 = vsel %vm1877_vm9, %v1879_v57, %v1875_v0  ;;  %vm1887_vm8 = vweird.f32 %v4558_v3  ;;  %vm4625_vm14 = vcmp.eq.f32.partialorder %v1891_v35, 8.507059e+37  ;;  %v1906_v21 = vand.u32 2147483647, %v4578_v29 }
 0x212   : > { %v1805_v16 = vsel %vm4601_vm4, %v1804_v20, %v1800_v63  ;;  %v1955_v32 = vmul.f32 %v1880_v50, %v4348_v6  ;;  %v1886_v5 = vadd.f32 %v2608_v30, %v1885_v53  ;;  %v1899_v19 = vsub.f32 1.0, %v1898_v47  ;;  %vm1889_vm10 = vmor %vm1887_vm8, %vm1888_vm3 }
 0x213   : > { %v2612_v18 = vpop.eup %2611  ;;  %v2005_v7 = vmul.f32 %v4055_v45, %v1949_v10  ;;  %v1894_v48 = vor.u32 1.1754944e-38, %v1893_v27  ;;  %vm1903_vm11 = vweird.f32 %v2610_v24  ;;  %v1908_v3 = vand.u32 2147483648, %v4578_v29 }
 0x214   : > { %v2011_v46 = vmul.f32 %v4182_v22, %v1955_v32  ;;  %v1890_v44 = vsel %vm1889_vm10, %v2608_v30, %v1886_v5  ;;  %v1900_v58 = vmul.f32 %v2610_v24, %v1899_v19  ;;  %v1913_v9 = vmul.f32 %v2612_v18, %v4597_v61  ;;  %v2091_v32 = vpop.permute.xlu1 %2090 }
 0x215   : > { %v1950_v2 = vmul.f32 %v1805_v16, %v4333_v51  ;;  %v1895_v6 = vsel %vm4625_vm14, %v1894_v48, %v1890_v44  ;;  %vm1902_vm12 = vweird.f32 %v4578_v29  ;;  %vm4641_vm13 = vcmp.eq.f32.partialorder %v1906_v21, 8.507059e+37 }
 0x216   : > { %v2053_v8 = vadd.f32 %v2052_v23, %v2011_v46  ;;  %v1956_v4 = vmul.f32 %v1895_v6, %v4360_v49  ;;  %v1901_v41 = vadd.f32 %v2610_v24, %v1900_v58  ;;  %v1914_v54 = vsub.f32 1.0, %v1913_v9  ;;  %vm1904_vm15 = vmor %vm1902_vm12, %vm1903_vm11 }
 0x217   : > { %v1909_v30 = vor.u32 1.1754944e-38, %v1908_v3  ;;  %vm1918_vm1 = vweird.f32 %v2612_v18  ;;  %v1921_v43 = vand.u32 2147483647, %v4597_v61  ;;  %v1923_v51 = vand.u32 2147483648, %v4597_v61 }
 0x218   : > { %v2054_v14 = vrot.slane %v2053_v8, 4  ;;  %v2012_v34 = vmul.f32 %v4182_v22, %v1956_v4  ;;  %v1905_v29 = vsel %vm1904_vm15, %v2610_v24, %v1901_v41  ;;  %v1915_v11 = vmul.f32 %v2612_v18, %v1914_v54 }
 0x219   : > { %v2069_v42 = vadd.f32 %v4569_v40, %v4344_v1  ;;  %v1998_v49 = vmul.f32 %v3913_v39, %v4572_v52  ;;  %v1910_v23 = vsel %vm4641_vm13, %v1909_v30, %v1905_v29  ;;  %vm1917_vm2 = vweird.f32 %v4597_v61 }
 0x21a   : > { %v2055_v36 = vadd.f32 %v2054_v14, %v2053_v8  ;;  %v2062_v20 = vadd.f32 %v2061_v12, %v2012_v34  ;;  %v1957_v35 = vmul.f32 %v1910_v23, %v4484_v37  ;;  %v1916_v56 = vadd.f32 %v2612_v18, %v1915_v11  ;;  %vm1919_vm4 = vmor %vm1917_vm2, %vm1918_vm1 }
 0x21b   : > { %v2070_v33 = vadd.f32 %v2069_v42, %v2005_v7  ;;  %v2006_v13 = vmul.f32 %v4055_v45, %v1950_v2  ;;  %vm1922_vm5 = vcmp.eq.f32.partialorder %v1921_v43, 8.507059e+37  ;;  %v1924_v1 = vor.u32 1.1754944e-38, %v1923_v51 }
 0x21c   : > { %v2056_v40 = vrot.slane %v2055_v36, 2  ;;  %v2063_v24 = vrot.slane %v2062_v20, 4  ;;  %v2013_v39 = vmul.f32 %v4182_v22, %v1957_v35  ;;  %v1920_v52 = vsel %vm1919_vm4, %v2612_v18, %v1916_v56 }
 0x21d   : > { %v2019_v61 = vadd.f32 %v2018_v38, %v4206_v55  ;;  %v2039_v37 = vadd.f32 %v2038_v15, %v4293_v26  ;;  %v2078_v12 = vadd.f32 %v1998_v49, %v4553_v25  ;;  %v1925_v45 = vsel %vm1922_vm5, %v1924_v1, %v1920_v52 }
 0x21e   : > { %v2048_v10 = vadd.f32 %v2047_v60, %v4305_v62  ;;  %v2064_v63 = vadd.f32 %v2063_v24, %v2062_v20  ;;  %v2071_v57 = vadd.f32 %v2070_v33, %v2013_v39  ;;  %v1958_v27 = vmul.f32 %v1925_v45, %v4521_v17 }
 0x21f   : > { %v4868_v0 = vrot.slane %v4291_v31, 2  ;;  %v2079_v55 = vadd.f32 %v2078_v12, %v2006_v13  ;;  %v2057_v38 = vadd.f32 %v2056_v40, %v2055_v36  ;;  %v2020_v15 = vrot.slane %v2019_v61, 2 }
 0x220   : > { %v2065_v47 = vrot.slane %v2064_v63, 2  ;;  %v2072_v50 = vrot.slane %v2071_v57, 4  ;;  %v2014_v26 = vmul.f32 %v4182_v22, %v1958_v27  ;;  %v2040_v25 = vrot.slane %v2039_v37, 1 }
 0x221   : > { %v2030_v53 = vadd.f32 %v4868_v0, %v4291_v31  ;;  %v2049_v59 = vrot.slane %v2048_v10, 1  ;;  %v2058_v5 = vrot.slane %v2057_v38, 1  ;;  %v2021_v31 = vadd.f32 %v2020_v15, %v2019_v61 }
 0x222   : > { %v2066_v21 = vadd.f32 %v2065_v47, %v2064_v63  ;;  %v2073_v16 = vadd.f32 %v2072_v50, %v2071_v57  ;;  %v2080_v62 = vadd.f32 %v2079_v55, %v2014_v26  ;;  %v2041_v7 = vadd.f32 %v2040_v25, %v2039_v37 }
 0x223   : > { %v2031_v60 = vrot.slane %v2030_v53, 1  ;;  %v2050_v48 = vadd.f32 %v2049_v59, %v2048_v10  ;;  %v2093_v22 = vperm.slane %v2091_v32, 0  ;;  %v2059_v58 = vadd.f32 %v2058_v5, %v2057_v38 }
 0x224   : > { %v2067_v17 = vrot.slane %v2066_v21, 1  ;;  %v2074_v19 = vrot.slane %v2073_v16, 2  ;;  %v2081_v18 = vrot.slane %v2080_v62, 4  ;;  %v2022_v28 = vrot.slane %v2021_v31, 1 }
 0x225   : > { %v2032_v44 = vadd.f32 %v2031_v60, %v2030_v53  ;;  %v2096_v41 = vadd.f32 %v2093_v22, %v2041_v7  ;;  %v2097_v54 = vadd.f32 %v2093_v22, %v2050_v48  ;;  %v2098_v51 = vadd.f32 %v2093_v22, %v2059_v58 }
 0x226   : > { %v2075_v3 = vadd.f32 %v2074_v19, %v2073_v16  ;;  %v2082_v46 = vadd.f32 %v2081_v18, %v2080_v62  ;;  %v2068_v9 = vadd.f32 %v2067_v17, %v2066_v21  ;;  %v2023_v29 = vadd.f32 %v2022_v28, %v2021_v31 }
 0x227   : > { %v2095_v30 = vadd.f32 %v2093_v22, %v2032_v44  ;;  %v2111_v42 = vrot.slane %v2096_v41, 6  ;;  %v2112_v49 = vrot.slane %v2097_v54, 5  ;;  %vm2119_vm0 = vcmask 1042434  }
 0x228   : > { %v2076_v2 = vrot.slane %v2075_v3, 1  ;;  %v2083_v6 = vrot.slane %v2082_v46, 2  ;;  %v2099_v14 = vadd.f32 %v2093_v22, %v2068_v9  ;;  %v2113_v20 = vrot.slane %v2098_v51, 4 }
 0x229   : > { %v2110_v23 = vrot.slane %v2095_v30, 7  ;;  %v2094_v33 = vadd.f32 %v2093_v22, %v2023_v29  ;;  %vm2117_vm6 = vcmask 1040384   ;;  %vm2123_vm9 = vcmask 1044484  }
 0x22a   : > { %v2077_v8 = vadd.f32 %v2076_v2, %v2075_v3  ;;  %v2084_v4 = vadd.f32 %v2083_v6, %v2082_v46  ;;  %v2114_v35 = vrot.slane %v2099_v14, 3  ;;  %vm2125_vm7 = vcmask 1046534  }
 0x22b   : > { %v2120_v1 = vsel %vm2119_vm0, %v2111_v42, %v2112_v49  ;;  %vm2121_vm3 = vcmask 1041408   ;;  %vm2127_vm8 = vcmask 1045508   ;;  %vm2129_vm14 = vcmask 1043456  }
 0x22c   : > { %v2085_v43 = vrot.slane %v2084_v4, 1  ;;  %v2100_v34 = vadd.f32 %v2093_v22, %v2077_v8  ;;  %v2118_v40 = vsel %vm2117_vm6, %v2094_v33, %v2110_v23  ;;  %v2124_v24 = vsel %vm2123_vm9, %v2113_v20, %v2114_v35 }
 0x22d   : > { %v2122_v52 = vsel %vm2121_vm3, %v2118_v40, %v2120_v1 }
 0x22e   : > { %v2086_v11 = vadd.f32 %v2085_v43, %v2084_v4  ;;  %v2115_v56 = vrot.slane %v2100_v34, 2 }
 0x230   : > { %v2101_v36 = vadd.f32 %v2093_v22, %v2086_v11 }
 0x232   : > { %v2116_v13 = vrot.slane %v2101_v36, 1 }
 0x234   : > { %v2126_v39 = vsel %vm2125_vm7, %v2115_v56, %v2116_v13 }
 0x235   : > { %v2128_v61 = vsel %vm2127_vm8, %v2124_v24, %v2126_v39 }
 0x236   : > { %v2130_v37 = vsel %vm2129_vm14, %v2122_v52, %v2128_v61 }
 0x237   : > { %2132 = vst [vmem:[%s271_s6] sm:$0xff] %v2130_v37 }
 0x238   : > { %2640 = shalt.err (!%p2637_p3)
}
 0x239   : > { %2314 = dma.vmem_to_hbm [thread:$0]  (%p2759_p5), %s2147_s20, 128, %s2149_s21, %s2134_s22  }
 0x23a PF: > { %p2320_p4 = scmp.ge.s32.totalorder %s2675_s29, 2  ;;  %s2160_s14 = sand.u32 1, %s2663_s26  }
 0x23b   : > { %s2161_s16 = scalar_lea.sflag [#allocation4], %s2160_s14 }
 0x23c   : > { %p2317_p7 = pnand %p2320_p4, %p2763_p6 }
 0x23e   : > { %p2318_p8 = pneg %p2317_p7 }
 0x240   : > { %2658 = dma.done.wait (%p2318_p8), %s2161_s16, 128  }
 0x241   : > { %2660 = vsyncadd (%p2318_p8), %s2161_s16, 4294967168  ;;  %p19_p9 = scmp.ge.s32.totalorder %s2746_s8, 4   ;;  %s4869_s26 = smov %s2667_s27 }
 0x242   : > { %s4870_s27 = smov %s2671_s28  ;;  %s4871_s28 = smov %s2757_s11 }
 0x243   : > { %s4872_s29 = smov %s2746_s8  ;;  %21 = sbr.rel (!%p19_p9) target bundleno = 6 (0x6), region = 83 }
 0x248   :  { %2167 = vsyncpa [#allocation4], 1 }
 0x249   :  { %2169 = vsyncpa [#allocation4 + $0x1], 1 }

</bundles_post_ra>
